<compile_context>
chip_gen: v6e
topology: v6e:2x2x1
jax: 0.10.0
libtpu: 0.0.40
codegen_flags: <defaults>
</compile_context>

<pallas_src>
import numpy as np
import jax
import jax.numpy as jnp
from jax import lax
from jax.experimental import pallas as pl
from jax.experimental.pallas import tpu as pltpu


def _vmem_limit_bytes():
    """Physical VMEM minus headroom for Mosaic internal scratch.

    v5e/v6e: 128 MiB physical -> ~120 MiB limit; v7x: 64 MiB -> ~56 MiB.
    Falls back to a 64 MiB limit (safe on every chip) if the query fails.
    """
    try:
        cap = int(pltpu.get_tpu_info().vmem_capacity_bytes)
    except Exception:
        return 64 * 1024 * 1024
    return max(32 * 1024 * 1024, cap - 8 * 1024 * 1024)


# -------------------- kernel A: stacked LSTM recurrence --------------------
def lstm_kernel(x_ref, wih_ref, whh_ref, b_ref, out_ref, gp_ref):
    """Layer-major stacked LSTM, gate order [i, f, o | g].

    x_ref   : (T, Bb, E)  bf16   (E == H required; layers stacked in place)
    wih_ref : (L, E, 4H)  bf16
    whh_ref : (L, H, 4H)  bf16
    b_ref   : (L, 1, 4H)  f32
    out_ref : (T, Bb, H)  bf16   top-layer hidden states; doubles as the
                                 per-layer input/output stream buffer
    gp_ref  : (T, Bb, 4H) f32    scratch: hoisted input->gates projections
    """
    T, Bb, _ = x_ref.shape
    L = wih_ref.shape[0]
    H = whh_ref.shape[1]
    # Contract last dim of (T, Bb, H) with dim 0 of (H, 4H): folds T*Bb into the
    # matmul M dimension with no in-kernel reshape copy.
    dn = (((2,), (0,)), ((), ()))

    for l in range(L):  # static layer loop
        # Hoisted, time-batched input projection with bias folded in once.
        src = x_ref[...] if l == 0 else out_ref[...]
        gp_ref[...] = (lax.dot_general(src, wih_ref[l], dn,
                                       preferred_element_type=jnp.float32)
                       + b_ref[l])
        # TODO(synk): at production T*B*4H sizes, chunk this projection over T
        # (or store gp in bf16) to stay inside v7x's 64 MiB VMEM.

        def step(t, carry, l=l):
            h_bf, c = carry                               # bf16 (Bb,H), f32 (Bb,H)
            # Only the recurrent half of the gate matmul is on the serial chain.
            # TODO(synk): pin W_hh in the MXU across the time loop via
            # pltpu.matmul_push_rhs/matmul_acc_lhs to avoid re-feeding the RHS.
            gates = gp_ref[t] + jnp.dot(h_bf, whh_ref[l],
                                        preferred_element_type=jnp.float32)
            sig = jax.nn.sigmoid(gates[:, :3 * H])        # i, f, o  (3H lanes)
            g = jnp.tanh(gates[:, 3 * H:])                # g        (H lanes)
            i = sig[:, 0 * H:1 * H]
            f = sig[:, 1 * H:2 * H]
            o = sig[:, 2 * H:3 * H]
            c_new = f * c + i * g
            h_new = (o * jnp.tanh(c_new)).astype(jnp.bfloat16)
            out_ref[t] = h_new                            # stream for next layer
            return (h_new, c_new)

        # TODO(synk): if production H < 128, pad H to 128 (lane-dense stores).
        h0 = jnp.zeros((Bb, H), jnp.bfloat16)
        c0 = jnp.zeros((Bb, H), jnp.float32)
        lax.fori_loop(0, T, step, (h0, c0), unroll=8)


# -------------------- kernel B: batched output projection --------------------
def proj_kernel(h_ref, w_ref, b_ref, o_ref):
    """o = h @ W_lin^T + b for one (M tile, V tile); bf16 lane-dense stores."""
    o_ref[...] = (jnp.dot(h_ref[...], w_ref[...],
                          preferred_element_type=jnp.float32)
                  + b_ref[...]).astype(o_ref.dtype)


def run_decoder_kernel(x_tm, wih_t, whh_t, bias, wlin_t_pad, blin_pad, V):
    T, Bp, E = x_tm.shape
    L = wih_t.shape[0]
    H = whh_t.shape[1]
    Vp = wlin_t_pad.shape[1]
    assert Bp % 8 == 0 and Vp % 128 == 0
    vmem_limit = _vmem_limit_bytes()

    # One batch block on single-TC chips; exactly two >=128-row blocks when the
    # padded batch is big enough to feed both v7x TensorCores in parallel.
    nb = 2 if (Bp >= 256 and Bp % 16 == 0) else 1
    Bb = Bp // nb

    # ---- LSTM recurrence -> top-layer hidden states (T, Bp, H) bf16 ----
    h_top = pl.pallas_call(
        lstm_kernel,
        out_shape=jax.ShapeDtypeStruct((T, Bp, H), jnp.bfloat16),
        grid=(nb,),
        in_specs=[
            pl.BlockSpec((T, Bb, E), lambda b: (0, b, 0)),
            pl.BlockSpec((L, E, 4 * H), lambda b: (0, 0, 0)),
            pl.BlockSpec((L, H, 4 * H), lambda b: (0, 0, 0)),
            pl.BlockSpec((L, 1, 4 * H), lambda b: (0, 0, 0)),
        ],
        out_specs=pl.BlockSpec((T, Bb, H), lambda b: (0, b, 0)),
        scratch_shapes=[pltpu.VMEM((T, Bb, 4 * H), jnp.float32)],
        compiler_params=pltpu.CompilerParams(
            dimension_semantics=("parallel",),
            vmem_limit_bytes=vmem_limit),
    )(x_tm, wih_t, whh_t, bias)

    # ---- output projection, tiled over M ("parallel") and V, bf16 logits ----
    M = T * Bp                                  # multiple of 8 (Bp padded)
    h_flat = h_top.reshape(M, H)

    if M <= 1024:
        TM = M
    else:
        TM = next((c for c in (512, 256, 128, 64, 32, 16, 8) if M % c == 0), M)
    if Vp <= 512:
        TV = Vp
    elif Vp % 512 == 0:
        TV = 512
    elif Vp % 256 == 0:
        TV = 256
    else:
        TV = 128

    logits_flat = pl.pallas_call(
        proj_kernel,
        out_shape=jax.ShapeDtypeStruct((M, Vp), jnp.bfloat16),
        grid=(M // TM, Vp // TV),
        in_specs=[
            pl.BlockSpec((TM, H), lambda i, j: (i, 0)),
            pl.BlockSpec((H, TV), lambda i, j: (0, j)),
            pl.BlockSpec((1, TV), lambda i, j: (0, j)),
        ],
        out_specs=pl.BlockSpec((TM, TV), lambda i, j: (i, j)),
        compiler_params=pltpu.CompilerParams(
            dimension_semantics=("parallel", "parallel"),
            vmem_limit_bytes=vmem_limit),
    )(h_flat, wlin_t_pad, blin_pad)

    return logits_flat.reshape(T, Bp, Vp)[:, :, :V]


# -------------------- pure-JAX reference (torch gate order [i,f,g,o]) --------------------
def ref_decoder(x_tm, wih_t, whh_t, bias, wlin_t, blin):
    """Mirrors the kernel's mixed precision but uses the ORIGINAL (un-permuted)
    torch-order weights, so it also cross-checks the gate-column repacking."""
    T, B, _ = x_tm.shape
    L = wih_t.shape[0]
    H = whh_t.shape[1]
    buf = x_tm                                                     # bf16 (T,B,H)
    for l in range(L):
        gp = (jnp.einsum('tbh,hg->tbg', buf, wih_t[l],
                         preferred_element_type=jnp.float32) + bias[l])
        h = jnp.zeros((B, H), jnp.bfloat16)
        c = jnp.zeros((B, H), jnp.float32)
        outs = []
        for t in range(T):
            gates = gp[t] + jnp.dot(h, whh_t[l], preferred_element_type=jnp.float32)
            i = jax.nn.sigmoid(gates[:, 0 * H:1 * H])
            f = jax.nn.sigmoid(gates[:, 1 * H:2 * H])
            g = jnp.tanh(gates[:, 2 * H:3 * H])
            o = jax.nn.sigmoid(gates[:, 3 * H:4 * H])
            c = f * c + i * g
            h = (o * jnp.tanh(c)).astype(jnp.bfloat16)
            outs.append(h)
        buf = jnp.stack(outs, 0)
    logits = (jnp.dot(buf.reshape(T * B, H), wlin_t,
                      preferred_element_type=jnp.float32)
              + blin).astype(jnp.bfloat16).reshape(T, B, -1)
    return logits


# -------------------- DecoderRNN wrapper (glue + kernels) --------------------
class DecoderRNNPallas:
    def __init__(self, embed_size, hidden_size, vocab_size, num_layers, key):
        assert embed_size == hidden_size, "in-place layer stacking requires E == H"
        self.E, self.H, self.V, self.L = embed_size, hidden_size, vocab_size, num_layers
        H = hidden_size
        ks = jax.random.split(key, 4 + 4 * num_layers)
        s = 0.1
        self.embed_table = s * jax.random.normal(ks[0], (vocab_size, embed_size), jnp.float32)

        def reorder(w):  # permute last (4H) axis from [i,f,g,o] -> [i,f,o,g]
            return jnp.concatenate([w[..., 0 * H:1 * H], w[..., 1 * H:2 * H],
                                    w[..., 3 * H:4 * H], w[..., 2 * H:3 * H]], axis=-1)

        wih, whh, b = [], [], []
        for l in range(num_layers):
            in_dim = embed_size if l == 0 else hidden_size
            w_ih = s * jax.random.normal(ks[1 + 4 * l], (4 * H, in_dim), jnp.float32)
            w_hh = s * jax.random.normal(ks[2 + 4 * l], (4 * H, H), jnp.float32)
            b_ih = s * jax.random.normal(ks[3 + 4 * l], (4 * H,), jnp.float32)
            b_hh = s * jax.random.normal(ks[4 + 4 * l], (4 * H,), jnp.float32)
            wih.append(w_ih.T)                       # (in, 4H), in == H == E
            whh.append(w_hh.T)                       # (H, 4H)
            b.append((b_ih + b_hh)[None, :])         # (1, 4H)

        # torch-order copies (for the reference / cross-check)
        self.wih_t_ref = jnp.stack(wih, 0).astype(jnp.bfloat16)     # (L, E, 4H)
        self.whh_t_ref = jnp.stack(whh, 0).astype(jnp.bfloat16)     # (L, H, 4H)
        self.bias_ref = jnp.stack(b, 0)                             # (L, 1, 4H) f32
        # kernel-order arrays [i,f,o,g]
        self.wih_t = reorder(self.wih_t_ref)
        self.whh_t = reorder(self.whh_t_ref)
        self.bias = reorder(self.bias_ref)

        w_lin = s * jax.random.normal(ks[-2], (vocab_size, hidden_size), jnp.float32)
        self.wlin_t = w_lin.T.astype(jnp.bfloat16)                  # (H, V)
        self.blin = (s * jax.random.normal(ks[-1], (vocab_size,), jnp.float32))[None, :]
        # pad V to a lane-dense multiple of 128 for the projection kernel
        self.Vp = ((vocab_size + 127) // 128) * 128
        pad_v = self.Vp - vocab_size
        self.wlin_t_pad = jnp.pad(self.wlin_t, ((0, 0), (0, pad_v)))
        self.blin_pad = jnp.pad(self.blin, ((0, 0), (0, pad_v)))

    def forward(self, features, captions, lengths):
        """features (B, E) f32, captions (B, Tc) int32, lengths: python list sorted desc."""
        B, Tc = captions.shape
        emb = jnp.take(self.embed_table, captions, axis=0)           # (B, Tc, E)
        seq = jnp.concatenate([features[:, None, :], emb], axis=1)   # (B, Tc+1, E)
        x_tm = jnp.transpose(seq, (1, 0, 2)).astype(jnp.bfloat16)    # (T, B, E) time-major

        # Pad batch to 8 sublanes (16 when big enough to split across 2 TCs).
        align = 16 if B >= 256 else 8
        Bp = ((B + align - 1) // align) * align
        if Bp != B:
            x_tm = jnp.pad(x_tm, ((0, 0), (0, Bp - B), (0, 0)))

        logits_all = run_decoder_kernel(x_tm, self.wih_t, self.whh_t, self.bias,
                                        self.wlin_t_pad, self.blin_pad, self.V)
        logits_all = logits_all[:, :B]                               # (T, B, V) bf16

        # pack_padded_sequence(batch_first=True) ordering: time-major over valid entries.
        # TODO(synk): Python-side static-lengths gather; retraces per (B, Tc, lengths).
        ts, bs = [], []
        for t in range(max(lengths)):
            for bi in range(B):
                if lengths[bi] > t:
                    ts.append(t)
                    bs.append(bi)
        ts = jnp.array(ts, jnp.int32)
        bs = jnp.array(bs, jnp.int32)
        return logits_all[ts, bs], logits_all                        # (sum(lengths), V)


if __name__ == "__main__":
    embed_size = 32
    hidden_size = 32
    vocab_size = 1000            # padded to 1024 lanes inside the wrapper
    num_layers = 2
    B, Tc = 2, 7                 # captions length 7 -> sequence length 8 with feature prepended
    lengths = [8, 5]             # sorted descending, <= Tc + 1

    key = jax.random.PRNGKey(0)
    kp, kf, kc = jax.random.split(key, 3)
    model = DecoderRNNPallas(embed_size, hidden_size, vocab_size, num_layers, kp)

    features = jax.random.normal(kf, (B, embed_size), jnp.float32)
    captions = jax.random.randint(kc, (B, Tc), 0, vocab_size, jnp.int32)

    packed_logits, logits_all = model.forward(features, captions, lengths)
    packed_logits = jax.block_until_ready(packed_logits)

    # sanity check against pure-JAX reference (torch gate order, same precision)
    emb = jnp.take(model.embed_table, captions, axis=0)
    seq = jnp.concatenate([features[:, None, :], emb], axis=1)
    x_tm = jnp.transpose(seq, (1, 0, 2)).astype(jnp.bfloat16)
    ref = ref_decoder(x_tm, model.wih_t_ref, model.whh_t_ref, model.bias_ref,
                      model.wlin_t, model.blin)
    assert packed_logits.shape == (sum(lengths), vocab_size)
    np.testing.assert_allclose(np.asarray(logits_all, dtype=np.float32),
                               np.asarray(ref, dtype=np.float32),
                               rtol=2e-2, atol=2e-2)

    print("KERNEL_OK")
</pallas_src>

<mosaic_0001>
module attributes {stable_mosaic.version = 11 : i64} {
  func.func @lstm_kernel(%arg0: i32, %arg1: memref<8x8x32xbf16, #tpu.memory_space<vmem>>, %arg2: memref<2x32x128xbf16, #tpu.memory_space<vmem>>, %arg3: memref<2x32x128xbf16, #tpu.memory_space<vmem>>, %arg4: memref<2x1x128xf32, #tpu.memory_space<vmem>>, %arg5: memref<8x8x32xbf16, #tpu.memory_space<vmem>>, %arg6: memref<8x8x128xf32, #tpu.memory_space<vmem>>) attributes {dimension_semantics = [#tpu.dimension_semantics<parallel>], iteration_bounds = array<i64: 1>, scalar_prefetch = 0 : i64, scratch_operands = 1 : i64, tpu.core_type = #tpu.core_type<tc>, window_params = [{transform_indices = @transform_0, window_bounds = array<i64: 8, 8, 32>}, {pipeline_mode = #tpu.pipeline_mode<synchronous>, transform_indices = @transform_1, window_bounds = array<i64: 2, 32, 128>}, {pipeline_mode = #tpu.pipeline_mode<synchronous>, transform_indices = @transform_2, window_bounds = array<i64: 2, 32, 128>}, {pipeline_mode = #tpu.pipeline_mode<synchronous>, transform_indices = @transform_3, window_bounds = array<i64: 2, 1, 128>}, {transform_indices = @transform_4, window_bounds = array<i64: 8, 8, 32>}]} {
    %c0 = arith.constant 0 : index
    %c0_0 = arith.constant 0 : index
    %c0_1 = arith.constant 0 : index
    %0 = vector.load %arg1[%c0, %c0_0, %c0_1] : memref<8x8x32xbf16, #tpu.memory_space<vmem>>, vector<8x8x32xbf16>
    %c0_2 = arith.constant 0 : index
    %c0_3 = arith.constant 0 : index
    %c0_4 = arith.constant 0 : index
    %1 = vector.load %arg2[%c0_2, %c0_3, %c0_4] : memref<2x32x128xbf16, #tpu.memory_space<vmem>>, vector<1x32x128xbf16>
    %2 = vector.shape_cast %1 : vector<1x32x128xbf16> to vector<32x128xbf16>
    %cst = arith.constant dense<0.000000e+00> : vector<8x8x128xf32>
    %3 = tpu.matmul %0, %2, %cst {dimension_numbers = #tpu.dot_dimension_numbers<[2], [0], [0, 1], [1], [0, 0, 0, 1, 1, 1], [], []>} : vector<8x8x32xbf16>, vector<32x128xbf16>, vector<8x8x128xf32> -> vector<8x8x128xf32>
    %c0_5 = arith.constant 0 : index
    %c0_6 = arith.constant 0 : index
    %c0_7 = arith.constant 0 : index
    %4 = vector.load %arg4[%c0_5, %c0_6, %c0_7] : memref<2x1x128xf32, #tpu.memory_space<vmem>>, vector<1x1x128xf32>
    %5 = vector.shape_cast %4 : vector<1x1x128xf32> to vector<1x128xf32>
    %6 = vector.shape_cast %5 : vector<1x128xf32> to vector<1x1x128xf32>
    %7 = vector.broadcast %6 : vector<1x1x128xf32> to vector<8x8x128xf32>
    %8 = arith.addf %3, %7 : vector<8x8x128xf32>
    %c0_8 = arith.constant 0 : index
    %c0_9 = arith.constant 0 : index
    %c0_10 = arith.constant 0 : index
    %9 = vector.load %arg6[%c0_8, %c0_9, %c0_10] : memref<8x8x128xf32, #tpu.memory_space<vmem>>, vector<8x8x128xf32>
    tpu.vector_store %arg6[%c0_8, %c0_9, %c0_10], %8 {strides = array<i32>} : memref<8x8x128xf32, #tpu.memory_space<vmem>>, vector<8x8x128xf32>,
    %cst_11 = arith.constant 0.000000e+00 : bf16
    %10 = vector.broadcast %cst_11 : bf16 to vector<8x32xbf16>
    %cst_12 = arith.constant 0.000000e+00 : f32
    %11 = vector.broadcast %cst_12 : f32 to vector<8x32xf32>
    %c0_i32 = arith.constant 0 : i32
    %12 = arith.index_cast %c0_i32 : i32 to index
    %c0_13 = arith.constant 0 : index
    %c0_14 = arith.constant 0 : index
    %13 = vector.load %arg6[%12, %c0_13, %c0_14] : memref<8x8x128xf32, #tpu.memory_space<vmem>>, vector<1x8x128xf32>
    %14 = vector.shape_cast %13 : vector<1x8x128xf32> to vector<8x128xf32>
    %c0_15 = arith.constant 0 : index
    %c0_16 = arith.constant 0 : index
    %c0_17 = arith.constant 0 : index
    %15 = vector.load %arg3[%c0_15, %c0_16, %c0_17] : memref<2x32x128xbf16, #tpu.memory_space<vmem>>, vector<1x32x128xbf16>
    %16 = vector.shape_cast %15 : vector<1x32x128xbf16> to vector<32x128xbf16>
    %cst_18 = arith.constant dense<0.000000e+00> : vector<8x128xf32>
    %17 = tpu.matmul %10, %16, %cst_18 {dimension_numbers = #tpu.dot_dimension_numbers<[1], [0], [0], [1], [0, 0, 1, 1], [], []>} : vector<8x32xbf16>, vector<32x128xbf16>, vector<8x128xf32> -> vector<8x128xf32>
    %18 = arith.addf %14, %17 : vector<8x128xf32>
    %19 = vector.extract_strided_slice %18 {offsets = [0, 0], sizes = [8, 96], strides = [1, 1]} : vector<8x128xf32> to vector<8x96xf32>
    %20 = arith.negf %19 : vector<8x96xf32>
    %21 = math.exp %20 : vector<8x96xf32>
    %cst_19 = arith.constant 1.000000e+00 : f32
    %22 = vector.broadcast %cst_19 : f32 to vector<8x96xf32>
    %23 = arith.addf %22, %21 : vector<8x96xf32>
    %24 = arith.divf %22, %23 : vector<8x96xf32>
    %25 = vector.extract_strided_slice %18 {offsets = [0, 96], sizes = [8, 32], strides = [1, 1]} : vector<8x128xf32> to vector<8x32xf32>
    %26 = math.tanh %25 : vector<8x32xf32>
    %27 = vector.extract_strided_slice %24 {offsets = [0, 0], sizes = [8, 32], strides = [1, 1]} : vector<8x96xf32> to vector<8x32xf32>
    %28 = vector.extract_strided_slice %24 {offsets = [0, 32], sizes = [8, 32], strides = [1, 1]} : vector<8x96xf32> to vector<8x32xf32>
    %29 = vector.extract_strided_slice %24 {offsets = [0, 64], sizes = [8, 32], strides = [1, 1]} : vector<8x96xf32> to vector<8x32xf32>
    %30 = arith.mulf %28, %11 : vector<8x32xf32>
    %31 = arith.mulf %27, %26 : vector<8x32xf32>
    %32 = arith.addf %30, %31 : vector<8x32xf32>
    %33 = math.tanh %32 : vector<8x32xf32>
    %34 = arith.mulf %29, %33 : vector<8x32xf32>
    %35 = arith.truncf %34 : vector<8x32xf32> to vector<8x32xbf16>
    %36 = arith.index_cast %c0_i32 : i32 to index
    %c0_20 = arith.constant 0 : index
    %c0_21 = arith.constant 0 : index
    %37 = vector.load %arg5[%36, %c0_20, %c0_21] : memref<8x8x32xbf16, #tpu.memory_space<vmem>>, vector<1x8x32xbf16>
    %38 = vector.shape_cast %37 : vector<1x8x32xbf16> to vector<8x32xbf16>
    %39 = vector.shape_cast %35 : vector<8x32xbf16> to vector<1x8x32xbf16>
    tpu.vector_store %arg5[%36, %c0_20, %c0_21], %39 {strides = array<i32>} : memref<8x8x32xbf16, #tpu.memory_space<vmem>>, vector<1x8x32xbf16>,
    %c1_i32 = arith.constant 1 : i32
    %40 = arith.index_cast %c1_i32 : i32 to index
    %c0_22 = arith.constant 0 : index
    %c0_23 = arith.constant 0 : index
    %41 = vector.load %arg6[%40, %c0_22, %c0_23] : memref<8x8x128xf32, #tpu.memory_space<vmem>>, vector<1x8x128xf32>
    %42 = vector.shape_cast %41 : vector<1x8x128xf32> to vector<8x128xf32>
    %c0_24 = arith.constant 0 : index
    %c0_25 = arith.constant 0 : index
    %c0_26 = arith.constant 0 : index
    %43 = vector.load %arg3[%c0_24, %c0_25, %c0_26] : memref<2x32x128xbf16, #tpu.memory_space<vmem>>, vector<1x32x128xbf16>
    %44 = vector.shape_cast %43 : vector<1x32x128xbf16> to vector<32x128xbf16>
    %cst_27 = arith.constant dense<0.000000e+00> : vector<8x128xf32>
    %45 = tpu.matmul %35, %44, %cst_27 {dimension_numbers = #tpu.dot_dimension_numbers<[1], [0], [0], [1], [0, 0, 1, 1], [], []>} : vector<8x32xbf16>, vector<32x128xbf16>, vector<8x128xf32> -> vector<8x128xf32>
    %46 = arith.addf %42, %45 : vector<8x128xf32>
    %47 = vector.extract_strided_slice %46 {offsets = [0, 0], sizes = [8, 96], strides = [1, 1]} : vector<8x128xf32> to vector<8x96xf32>
    %48 = arith.negf %47 : vector<8x96xf32>
    %49 = math.exp %48 : vector<8x96xf32>
    %cst_28 = arith.constant 1.000000e+00 : f32
    %50 = vector.broadcast %cst_28 : f32 to vector<8x96xf32>
    %51 = arith.addf %50, %49 : vector<8x96xf32>
    %52 = arith.divf %50, %51 : vector<8x96xf32>
    %53 = vector.extract_strided_slice %46 {offsets = [0, 96], sizes = [8, 32], strides = [1, 1]} : vector<8x128xf32> to vector<8x32xf32>
    %54 = math.tanh %53 : vector<8x32xf32>
    %55 = vector.extract_strided_slice %52 {offsets = [0, 0], sizes = [8, 32], strides = [1, 1]} : vector<8x96xf32> to vector<8x32xf32>
    %56 = vector.extract_strided_slice %52 {offsets = [0, 32], sizes = [8, 32], strides = [1, 1]} : vector<8x96xf32> to vector<8x32xf32>
    %57 = vector.extract_strided_slice %52 {offsets = [0, 64], sizes = [8, 32], strides = [1, 1]} : vector<8x96xf32> to vector<8x32xf32>
    %58 = arith.mulf %56, %32 : vector<8x32xf32>
    %59 = arith.mulf %55, %54 : vector<8x32xf32>
    %60 = arith.addf %58, %59 : vector<8x32xf32>
    %61 = math.tanh %60 : vector<8x32xf32>
    %62 = arith.mulf %57, %61 : vector<8x32xf32>
    %63 = arith.truncf %62 : vector<8x32xf32> to vector<8x32xbf16>
    %64 = arith.index_cast %c1_i32 : i32 to index
    %c0_29 = arith.constant 0 : index
    %c0_30 = arith.constant 0 : index
    %65 = vector.load %arg5[%64, %c0_29, %c0_30] : memref<8x8x32xbf16, #tpu.memory_space<vmem>>, vector<1x8x32xbf16>
    %66 = vector.shape_cast %65 : vector<1x8x32xbf16> to vector<8x32xbf16>
    %67 = vector.shape_cast %63 : vector<8x32xbf16> to vector<1x8x32xbf16>
    tpu.vector_store %arg5[%64, %c0_29, %c0_30], %67 {strides = array<i32>} : memref<8x8x32xbf16, #tpu.memory_space<vmem>>, vector<1x8x32xbf16>,
    %c2_i32 = arith.constant 2 : i32
    %68 = arith.index_cast %c2_i32 : i32 to index
    %c0_31 = arith.constant 0 : index
    %c0_32 = arith.constant 0 : index
    %69 = vector.load %arg6[%68, %c0_31, %c0_32] : memref<8x8x128xf32, #tpu.memory_space<vmem>>, vector<1x8x128xf32>
    %70 = vector.shape_cast %69 : vector<1x8x128xf32> to vector<8x128xf32>
    %c0_33 = arith.constant 0 : index
    %c0_34 = arith.constant 0 : index
    %c0_35 = arith.constant 0 : index
    %71 = vector.load %arg3[%c0_33, %c0_34, %c0_35] : memref<2x32x128xbf16, #tpu.memory_space<vmem>>, vector<1x32x128xbf16>
    %72 = vector.shape_cast %71 : vector<1x32x128xbf16> to vector<32x128xbf16>
    %cst_36 = arith.constant dense<0.000000e+00> : vector<8x128xf32>
    %73 = tpu.matmul %63, %72, %cst_36 {dimension_numbers = #tpu.dot_dimension_numbers<[1], [0], [0], [1], [0, 0, 1, 1], [], []>} : vector<8x32xbf16>, vector<32x128xbf16>, vector<8x128xf32> -> vector<8x128xf32>
    %74 = arith.addf %70, %73 : vector<8x128xf32>
    %75 = vector.extract_strided_slice %74 {offsets = [0, 0], sizes = [8, 96], strides = [1, 1]} : vector<8x128xf32> to vector<8x96xf32>
    %76 = arith.negf %75 : vector<8x96xf32>
    %77 = math.exp %76 : vector<8x96xf32>
    %cst_37 = arith.constant 1.000000e+00 : f32
    %78 = vector.broadcast %cst_37 : f32 to vector<8x96xf32>
    %79 = arith.addf %78, %77 : vector<8x96xf32>
    %80 = arith.divf %78, %79 : vector<8x96xf32>
    %81 = vector.extract_strided_slice %74 {offsets = [0, 96], sizes = [8, 32], strides = [1, 1]} : vector<8x128xf32> to vector<8x32xf32>
    %82 = math.tanh %81 : vector<8x32xf32>
    %83 = vector.extract_strided_slice %80 {offsets = [0, 0], sizes = [8, 32], strides = [1, 1]} : vector<8x96xf32> to vector<8x32xf32>
    %84 = vector.extract_strided_slice %80 {offsets = [0, 32], sizes = [8, 32], strides = [1, 1]} : vector<8x96xf32> to vector<8x32xf32>
    %85 = vector.extract_strided_slice %80 {offsets = [0, 64], sizes = [8, 32], strides = [1, 1]} : vector<8x96xf32> to vector<8x32xf32>
    %86 = arith.mulf %84, %60 : vector<8x32xf32>
    %87 = arith.mulf %83, %82 : vector<8x32xf32>
    %88 = arith.addf %86, %87 : vector<8x32xf32>
    %89 = math.tanh %88 : vector<8x32xf32>
    %90 = arith.mulf %85, %89 : vector<8x32xf32>
    %91 = arith.truncf %90 : vector<8x32xf32> to vector<8x32xbf16>
    %92 = arith.index_cast %c2_i32 : i32 to index
    %c0_38 = arith.constant 0 : index
    %c0_39 = arith.constant 0 : index
    %93 = vector.load %arg5[%92, %c0_38, %c0_39] : memref<8x8x32xbf16, #tpu.memory_space<vmem>>, vector<1x8x32xbf16>
    %94 = vector.shape_cast %93 : vector<1x8x32xbf16> to vector<8x32xbf16>
    %95 = vector.shape_cast %91 : vector<8x32xbf16> to vector<1x8x32xbf16>
    tpu.vector_store %arg5[%92, %c0_38, %c0_39], %95 {strides = array<i32>} : memref<8x8x32xbf16, #tpu.memory_space<vmem>>, vector<1x8x32xbf16>,
    %c3_i32 = arith.constant 3 : i32
    %96 = arith.index_cast %c3_i32 : i32 to index
    %c0_40 = arith.constant 0 : index
    %c0_41 = arith.constant 0 : index
    %97 = vector.load %arg6[%96, %c0_40, %c0_41] : memref<8x8x128xf32, #tpu.memory_space<vmem>>, vector<1x8x128xf32>
    %98 = vector.shape_cast %97 : vector<1x8x128xf32> to vector<8x128xf32>
    %c0_42 = arith.constant 0 : index
    %c0_43 = arith.constant 0 : index
    %c0_44 = arith.constant 0 : index
    %99 = vector.load %arg3[%c0_42, %c0_43, %c0_44] : memref<2x32x128xbf16, #tpu.memory_space<vmem>>, vector<1x32x128xbf16>
    %100 = vector.shape_cast %99 : vector<1x32x128xbf16> to vector<32x128xbf16>
    %cst_45 = arith.constant dense<0.000000e+00> : vector<8x128xf32>
    %101 = tpu.matmul %91, %100, %cst_45 {dimension_numbers = #tpu.dot_dimension_numbers<[1], [0], [0], [1], [0, 0, 1, 1], [], []>} : vector<8x32xbf16>, vector<32x128xbf16>, vector<8x128xf32> -> vector<8x128xf32>
    %102 = arith.addf %98, %101 : vector<8x128xf32>
    %103 = vector.extract_strided_slice %102 {offsets = [0, 0], sizes = [8, 96], strides = [1, 1]} : vector<8x128xf32> to vector<8x96xf32>
    %104 = arith.negf %103 : vector<8x96xf32>
    %105 = math.exp %104 : vector<8x96xf32>
    %cst_46 = arith.constant 1.000000e+00 : f32
    %106 = vector.broadcast %cst_46 : f32 to vector<8x96xf32>
    %107 = arith.addf %106, %105 : vector<8x96xf32>
    %108 = arith.divf %106, %107 : vector<8x96xf32>
    %109 = vector.extract_strided_slice %102 {offsets = [0, 96], sizes = [8, 32], strides = [1, 1]} : vector<8x128xf32> to vector<8x32xf32>
    %110 = math.tanh %109 : vector<8x32xf32>
    %111 = vector.extract_strided_slice %108 {offsets = [0, 0], sizes = [8, 32], strides = [1, 1]} : vector<8x96xf32> to vector<8x32xf32>
    %112 = vector.extract_strided_slice %108 {offsets = [0, 32], sizes = [8, 32], strides = [1, 1]} : vector<8x96xf32> to vector<8x32xf32>
    %113 = vector.extract_strided_slice %108 {offsets = [0, 64], sizes = [8, 32], strides = [1, 1]} : vector<8x96xf32> to vector<8x32xf32>
    %114 = arith.mulf %112, %88 : vector<8x32xf32>
    %115 = arith.mulf %111, %110 : vector<8x32xf32>
    %116 = arith.addf %114, %115 : vector<8x32xf32>
    %117 = math.tanh %116 : vector<8x32xf32>
    %118 = arith.mulf %113, %117 : vector<8x32xf32>
    %119 = arith.truncf %118 : vector<8x32xf32> to vector<8x32xbf16>
    %120 = arith.index_cast %c3_i32 : i32 to index
    %c0_47 = arith.constant 0 : index
    %c0_48 = arith.constant 0 : index
    %121 = vector.load %arg5[%120, %c0_47, %c0_48] : memref<8x8x32xbf16, #tpu.memory_space<vmem>>, vector<1x8x32xbf16>
    %122 = vector.shape_cast %121 : vector<1x8x32xbf16> to vector<8x32xbf16>
    %123 = vector.shape_cast %119 : vector<8x32xbf16> to vector<1x8x32xbf16>
    tpu.vector_store %arg5[%120, %c0_47, %c0_48], %123 {strides = array<i32>} : memref<8x8x32xbf16, #tpu.memory_space<vmem>>, vector<1x8x32xbf16>,
    %c4_i32 = arith.constant 4 : i32
    %124 = arith.index_cast %c4_i32 : i32 to index
    %c0_49 = arith.constant 0 : index
    %c0_50 = arith.constant 0 : index
    %125 = vector.load %arg6[%124, %c0_49, %c0_50] : memref<8x8x128xf32, #tpu.memory_space<vmem>>, vector<1x8x128xf32>
    %126 = vector.shape_cast %125 : vector<1x8x128xf32> to vector<8x128xf32>
    %c0_51 = arith.constant 0 : index
    %c0_52 = arith.constant 0 : index
    %c0_53 = arith.constant 0 : index
    %127 = vector.load %arg3[%c0_51, %c0_52, %c0_53] : memref<2x32x128xbf16, #tpu.memory_space<vmem>>, vector<1x32x128xbf16>
    %128 = vector.shape_cast %127 : vector<1x32x128xbf16> to vector<32x128xbf16>
    %cst_54 = arith.constant dense<0.000000e+00> : vector<8x128xf32>
    %129 = tpu.matmul %119, %128, %cst_54 {dimension_numbers = #tpu.dot_dimension_numbers<[1], [0], [0], [1], [0, 0, 1, 1], [], []>} : vector<8x32xbf16>, vector<32x128xbf16>, vector<8x128xf32> -> vector<8x128xf32>
    %130 = arith.addf %126, %129 : vector<8x128xf32>
    %131 = vector.extract_strided_slice %130 {offsets = [0, 0], sizes = [8, 96], strides = [1, 1]} : vector<8x128xf32> to vector<8x96xf32>
    %132 = arith.negf %131 : vector<8x96xf32>
    %133 = math.exp %132 : vector<8x96xf32>
    %cst_55 = arith.constant 1.000000e+00 : f32
    %134 = vector.broadcast %cst_55 : f32 to vector<8x96xf32>
    %135 = arith.addf %134, %133 : vector<8x96xf32>
    %136 = arith.divf %134, %135 : vector<8x96xf32>
    %137 = vector.extract_strided_slice %130 {offsets = [0, 96], sizes = [8, 32], strides = [1, 1]} : vector<8x128xf32> to vector<8x32xf32>
    %138 = math.tanh %137 : vector<8x32xf32>
    %139 = vector.extract_strided_slice %136 {offsets = [0, 0], sizes = [8, 32], strides = [1, 1]} : vector<8x96xf32> to vector<8x32xf32>
    %140 = vector.extract_strided_slice %136 {offsets = [0, 32], sizes = [8, 32], strides = [1, 1]} : vector<8x96xf32> to vector<8x32xf32>
    %141 = vector.extract_strided_slice %136 {offsets = [0, 64], sizes = [8, 32], strides = [1, 1]} : vector<8x96xf32> to vector<8x32xf32>
    %142 = arith.mulf %140, %116 : vector<8x32xf32>
    %143 = arith.mulf %139, %138 : vector<8x32xf32>
    %144 = arith.addf %142, %143 : vector<8x32xf32>
    %145 = math.tanh %144 : vector<8x32xf32>
    %146 = arith.mulf %141, %145 : vector<8x32xf32>
    %147 = arith.truncf %146 : vector<8x32xf32> to vector<8x32xbf16>
    %148 = arith.index_cast %c4_i32 : i32 to index
    %c0_56 = arith.constant 0 : index
    %c0_57 = arith.constant 0 : index
    %149 = vector.load %arg5[%148, %c0_56, %c0_57] : memref<8x8x32xbf16, #tpu.memory_space<vmem>>, vector<1x8x32xbf16>
    %150 = vector.shape_cast %149 : vector<1x8x32xbf16> to vector<8x32xbf16>
    %151 = vector.shape_cast %147 : vector<8x32xbf16> to vector<1x8x32xbf16>
    tpu.vector_store %arg5[%148, %c0_56, %c0_57], %151 {strides = array<i32>} : memref<8x8x32xbf16, #tpu.memory_space<vmem>>, vector<1x8x32xbf16>,
    %c5_i32 = arith.constant 5 : i32
    %152 = arith.index_cast %c5_i32 : i32 to index
    %c0_58 = arith.constant 0 : index
    %c0_59 = arith.constant 0 : index
    %153 = vector.load %arg6[%152, %c0_58, %c0_59] : memref<8x8x128xf32, #tpu.memory_space<vmem>>, vector<1x8x128xf32>
    %154 = vector.shape_cast %153 : vector<1x8x128xf32> to vector<8x128xf32>
    %c0_60 = arith.constant 0 : index
    %c0_61 = arith.constant 0 : index
    %c0_62 = arith.constant 0 : index
    %155 = vector.load %arg3[%c0_60, %c0_61, %c0_62] : memref<2x32x128xbf16, #tpu.memory_space<vmem>>, vector<1x32x128xbf16>
    %156 = vector.shape_cast %155 : vector<1x32x128xbf16> to vector<32x128xbf16>
    %cst_63 = arith.constant dense<0.000000e+00> : vector<8x128xf32>
    %157 = tpu.matmul %147, %156, %cst_63 {dimension_numbers = #tpu.dot_dimension_numbers<[1], [0], [0], [1], [0, 0, 1, 1], [], []>} : vector<8x32xbf16>, vector<32x128xbf16>, vector<8x128xf32> -> vector<8x128xf32>
    %158 = arith.addf %154, %157 : vector<8x128xf32>
    %159 = vector.extract_strided_slice %158 {offsets = [0, 0], sizes = [8, 96], strides = [1, 1]} : vector<8x128xf32> to vector<8x96xf32>
    %160 = arith.negf %159 : vector<8x96xf32>
    %161 = math.exp %160 : vector<8x96xf32>
    %cst_64 = arith.constant 1.000000e+00 : f32
    %162 = vector.broadcast %cst_64 : f32 to vector<8x96xf32>
    %163 = arith.addf %162, %161 : vector<8x96xf32>
    %164 = arith.divf %162, %163 : vector<8x96xf32>
    %165 = vector.extract_strided_slice %158 {offsets = [0, 96], sizes = [8, 32], strides = [1, 1]} : vector<8x128xf32> to vector<8x32xf32>
    %166 = math.tanh %165 : vector<8x32xf32>
    %167 = vector.extract_strided_slice %164 {offsets = [0, 0], sizes = [8, 32], strides = [1, 1]} : vector<8x96xf32> to vector<8x32xf32>
    %168 = vector.extract_strided_slice %164 {offsets = [0, 32], sizes = [8, 32], strides = [1, 1]} : vector<8x96xf32> to vector<8x32xf32>
    %169 = vector.extract_strided_slice %164 {offsets = [0, 64], sizes = [8, 32], strides = [1, 1]} : vector<8x96xf32> to vector<8x32xf32>
    %170 = arith.mulf %168, %144 : vector<8x32xf32>
    %171 = arith.mulf %167, %166 : vector<8x32xf32>
    %172 = arith.addf %170, %171 : vector<8x32xf32>
    %173 = math.tanh %172 : vector<8x32xf32>
    %174 = arith.mulf %169, %173 : vector<8x32xf32>
    %175 = arith.truncf %174 : vector<8x32xf32> to vector<8x32xbf16>
    %176 = arith.index_cast %c5_i32 : i32 to index
    %c0_65 = arith.constant 0 : index
    %c0_66 = arith.constant 0 : index
    %177 = vector.load %arg5[%176, %c0_65, %c0_66] : memref<8x8x32xbf16, #tpu.memory_space<vmem>>, vector<1x8x32xbf16>
    %178 = vector.shape_cast %177 : vector<1x8x32xbf16> to vector<8x32xbf16>
    %179 = vector.shape_cast %175 : vector<8x32xbf16> to vector<1x8x32xbf16>
    tpu.vector_store %arg5[%176, %c0_65, %c0_66], %179 {strides = array<i32>} : memref<8x8x32xbf16, #tpu.memory_space<vmem>>, vector<1x8x32xbf16>,
    %c6_i32 = arith.constant 6 : i32
    %180 = arith.index_cast %c6_i32 : i32 to index
    %c0_67 = arith.constant 0 : index
    %c0_68 = arith.constant 0 : index
    %181 = vector.load %arg6[%180, %c0_67, %c0_68] : memref<8x8x128xf32, #tpu.memory_space<vmem>>, vector<1x8x128xf32>
    %182 = vector.shape_cast %181 : vector<1x8x128xf32> to vector<8x128xf32>
    %c0_69 = arith.constant 0 : index
    %c0_70 = arith.constant 0 : index
    %c0_71 = arith.constant 0 : index
    %183 = vector.load %arg3[%c0_69, %c0_70, %c0_71] : memref<2x32x128xbf16, #tpu.memory_space<vmem>>, vector<1x32x128xbf16>
    %184 = vector.shape_cast %183 : vector<1x32x128xbf16> to vector<32x128xbf16>
    %cst_72 = arith.constant dense<0.000000e+00> : vector<8x128xf32>
    %185 = tpu.matmul %175, %184, %cst_72 {dimension_numbers = #tpu.dot_dimension_numbers<[1], [0], [0], [1], [0, 0, 1, 1], [], []>} : vector<8x32xbf16>, vector<32x128xbf16>, vector<8x128xf32> -> vector<8x128xf32>
    %186 = arith.addf %182, %185 : vector<8x128xf32>
    %187 = vector.extract_strided_slice %186 {offsets = [0, 0], sizes = [8, 96], strides = [1, 1]} : vector<8x128xf32> to vector<8x96xf32>
    %188 = arith.negf %187 : vector<8x96xf32>
    %189 = math.exp %188 : vector<8x96xf32>
    %cst_73 = arith.constant 1.000000e+00 : f32
    %190 = vector.broadcast %cst_73 : f32 to vector<8x96xf32>
    %191 = arith.addf %190, %189 : vector<8x96xf32>
    %192 = arith.divf %190, %191 : vector<8x96xf32>
    %193 = vector.extract_strided_slice %186 {offsets = [0, 96], sizes = [8, 32], strides = [1, 1]} : vector<8x128xf32> to vector<8x32xf32>
    %194 = math.tanh %193 : vector<8x32xf32>
    %195 = vector.extract_strided_slice %192 {offsets = [0, 0], sizes = [8, 32], strides = [1, 1]} : vector<8x96xf32> to vector<8x32xf32>
    %196 = vector.extract_strided_slice %192 {offsets = [0, 32], sizes = [8, 32], strides = [1, 1]} : vector<8x96xf32> to vector<8x32xf32>
    %197 = vector.extract_strided_slice %192 {offsets = [0, 64], sizes = [8, 32], strides = [1, 1]} : vector<8x96xf32> to vector<8x32xf32>
    %198 = arith.mulf %196, %172 : vector<8x32xf32>
    %199 = arith.mulf %195, %194 : vector<8x32xf32>
    %200 = arith.addf %198, %199 : vector<8x32xf32>
    %201 = math.tanh %200 : vector<8x32xf32>
    %202 = arith.mulf %197, %201 : vector<8x32xf32>
    %203 = arith.truncf %202 : vector<8x32xf32> to vector<8x32xbf16>
    %204 = arith.index_cast %c6_i32 : i32 to index
    %c0_74 = arith.constant 0 : index
    %c0_75 = arith.constant 0 : index
    %205 = vector.load %arg5[%204, %c0_74, %c0_75] : memref<8x8x32xbf16, #tpu.memory_space<vmem>>, vector<1x8x32xbf16>
    %206 = vector.shape_cast %205 : vector<1x8x32xbf16> to vector<8x32xbf16>
    %207 = vector.shape_cast %203 : vector<8x32xbf16> to vector<1x8x32xbf16>
    tpu.vector_store %arg5[%204, %c0_74, %c0_75], %207 {strides = array<i32>} : memref<8x8x32xbf16, #tpu.memory_space<vmem>>, vector<1x8x32xbf16>,
    %c7_i32 = arith.constant 7 : i32
    %208 = arith.index_cast %c7_i32 : i32 to index
    %c0_76 = arith.constant 0 : index
    %c0_77 = arith.constant 0 : index
    %209 = vector.load %arg6[%208, %c0_76, %c0_77] : memref<8x8x128xf32, #tpu.memory_space<vmem>>, vector<1x8x128xf32>
    %210 = vector.shape_cast %209 : vector<1x8x128xf32> to vector<8x128xf32>
    %c0_78 = arith.constant 0 : index
    %c0_79 = arith.constant 0 : index
    %c0_80 = arith.constant 0 : index
    %211 = vector.load %arg3[%c0_78, %c0_79, %c0_80] : memref<2x32x128xbf16, #tpu.memory_space<vmem>>, vector<1x32x128xbf16>
    %212 = vector.shape_cast %211 : vector<1x32x128xbf16> to vector<32x128xbf16>
    %cst_81 = arith.constant dense<0.000000e+00> : vector<8x128xf32>
    %213 = tpu.matmul %203, %212, %cst_81 {dimension_numbers = #tpu.dot_dimension_numbers<[1], [0], [0], [1], [0, 0, 1, 1], [], []>} : vector<8x32xbf16>, vector<32x128xbf16>, vector<8x128xf32> -> vector<8x128xf32>
    %214 = arith.addf %210, %213 : vector<8x128xf32>
    %215 = vector.extract_strided_slice %214 {offsets = [0, 0], sizes = [8, 96], strides = [1, 1]} : vector<8x128xf32> to vector<8x96xf32>
    %216 = arith.negf %215 : vector<8x96xf32>
    %217 = math.exp %216 : vector<8x96xf32>
    %cst_82 = arith.constant 1.000000e+00 : f32
    %218 = vector.broadcast %cst_82 : f32 to vector<8x96xf32>
    %219 = arith.addf %218, %217 : vector<8x96xf32>
    %220 = arith.divf %218, %219 : vector<8x96xf32>
    %221 = vector.extract_strided_slice %214 {offsets = [0, 96], sizes = [8, 32], strides = [1, 1]} : vector<8x128xf32> to vector<8x32xf32>
    %222 = math.tanh %221 : vector<8x32xf32>
    %223 = vector.extract_strided_slice %220 {offsets = [0, 0], sizes = [8, 32], strides = [1, 1]} : vector<8x96xf32> to vector<8x32xf32>
    %224 = vector.extract_strided_slice %220 {offsets = [0, 32], sizes = [8, 32], strides = [1, 1]} : vector<8x96xf32> to vector<8x32xf32>
    %225 = vector.extract_strided_slice %220 {offsets = [0, 64], sizes = [8, 32], strides = [1, 1]} : vector<8x96xf32> to vector<8x32xf32>
    %226 = arith.mulf %224, %200 : vector<8x32xf32>
    %227 = arith.mulf %223, %222 : vector<8x32xf32>
    %228 = arith.addf %226, %227 : vector<8x32xf32>
    %229 = math.tanh %228 : vector<8x32xf32>
    %230 = arith.mulf %225, %229 : vector<8x32xf32>
    %231 = arith.truncf %230 : vector<8x32xf32> to vector<8x32xbf16>
    %232 = arith.index_cast %c7_i32 : i32 to index
    %c0_83 = arith.constant 0 : index
    %c0_84 = arith.constant 0 : index
    %233 = vector.load %arg5[%232, %c0_83, %c0_84] : memref<8x8x32xbf16, #tpu.memory_space<vmem>>, vector<1x8x32xbf16>
    %234 = vector.shape_cast %233 : vector<1x8x32xbf16> to vector<8x32xbf16>
    %235 = vector.shape_cast %231 : vector<8x32xbf16> to vector<1x8x32xbf16>
    tpu.vector_store %arg5[%232, %c0_83, %c0_84], %235 {strides = array<i32>} : memref<8x8x32xbf16, #tpu.memory_space<vmem>>, vector<1x8x32xbf16>,
    %c8_i32 = arith.constant 8 : i32
    %c0_85 = arith.constant 0 : index
    %c0_86 = arith.constant 0 : index
    %c0_87 = arith.constant 0 : index
    %236 = vector.load %arg5[%c0_85, %c0_86, %c0_87] : memref<8x8x32xbf16, #tpu.memory_space<vmem>>, vector<8x8x32xbf16>
    %c1 = arith.constant 1 : index
    %c0_88 = arith.constant 0 : index
    %c0_89 = arith.constant 0 : index
    %237 = vector.load %arg2[%c1, %c0_88, %c0_89] : memref<2x32x128xbf16, #tpu.memory_space<vmem>>, vector<1x32x128xbf16>
    %238 = vector.shape_cast %237 : vector<1x32x128xbf16> to vector<32x128xbf16>
    %cst_90 = arith.constant dense<0.000000e+00> : vector<8x8x128xf32>
    %239 = tpu.matmul %236, %238, %cst_90 {dimension_numbers = #tpu.dot_dimension_numbers<[2], [0], [0, 1], [1], [0, 0, 0, 1, 1, 1], [], []>} : vector<8x8x32xbf16>, vector<32x128xbf16>, vector<8x8x128xf32> -> vector<8x8x128xf32>
    %c1_91 = arith.constant 1 : index
    %c0_92 = arith.constant 0 : index
    %c0_93 = arith.constant 0 : index
    %240 = vector.load %arg4[%c1_91, %c0_92, %c0_93] : memref<2x1x128xf32, #tpu.memory_space<vmem>>, vector<1x1x128xf32>
    %241 = vector.shape_cast %240 : vector<1x1x128xf32> to vector<1x128xf32>
    %242 = vector.shape_cast %241 : vector<1x128xf32> to vector<1x1x128xf32>
    %243 = vector.broadcast %242 : vector<1x1x128xf32> to vector<8x8x128xf32>
    %244 = arith.addf %239, %243 : vector<8x8x128xf32>
    %c0_94 = arith.constant 0 : index
    %c0_95 = arith.constant 0 : index
    %c0_96 = arith.constant 0 : index
    %245 = vector.load %arg6[%c0_94, %c0_95, %c0_96] : memref<8x8x128xf32, #tpu.memory_space<vmem>>, vector<8x8x128xf32>
    tpu.vector_store %arg6[%c0_94, %c0_95, %c0_96], %244 {strides = array<i32>} : memref<8x8x128xf32, #tpu.memory_space<vmem>>, vector<8x8x128xf32>,
    %cst_97 = arith.constant 0.000000e+00 : bf16
    %246 = vector.broadcast %cst_97 : bf16 to vector<8x32xbf16>
    %cst_98 = arith.constant 0.000000e+00 : f32
    %247 = vector.broadcast %cst_98 : f32 to vector<8x32xf32>
    %c0_i32_99 = arith.constant 0 : i32
    %248 = arith.index_cast %c0_i32_99 : i32 to index
    %c0_100 = arith.constant 0 : index
    %c0_101 = arith.constant 0 : index
    %249 = vector.load %arg6[%248, %c0_100, %c0_101] : memref<8x8x128xf32, #tpu.memory_space<vmem>>, vector<1x8x128xf32>
    %250 = vector.shape_cast %249 : vector<1x8x128xf32> to vector<8x128xf32>
    %c1_102 = arith.constant 1 : index
    %c0_103 = arith.constant 0 : index
    %c0_104 = arith.constant 0 : index
    %251 = vector.load %arg3[%c1_102, %c0_103, %c0_104] : memref<2x32x128xbf16, #tpu.memory_space<vmem>>, vector<1x32x128xbf16>
    %252 = vector.shape_cast %251 : vector<1x32x128xbf16> to vector<32x128xbf16>
    %cst_105 = arith.constant dense<0.000000e+00> : vector<8x128xf32>
    %253 = tpu.matmul %246, %252, %cst_105 {dimension_numbers = #tpu.dot_dimension_numbers<[1], [0], [0], [1], [0, 0, 1, 1], [], []>} : vector<8x32xbf16>, vector<32x128xbf16>, vector<8x128xf32> -> vector<8x128xf32>
    %254 = arith.addf %250, %253 : vector<8x128xf32>
    %255 = vector.extract_strided_slice %254 {offsets = [0, 0], sizes = [8, 96], strides = [1, 1]} : vector<8x128xf32> to vector<8x96xf32>
    %256 = arith.negf %255 : vector<8x96xf32>
    %257 = math.exp %256 : vector<8x96xf32>
    %cst_106 = arith.constant 1.000000e+00 : f32
    %258 = vector.broadcast %cst_106 : f32 to vector<8x96xf32>
    %259 = arith.addf %258, %257 : vector<8x96xf32>
    %260 = arith.divf %258, %259 : vector<8x96xf32>
    %261 = vector.extract_strided_slice %254 {offsets = [0, 96], sizes = [8, 32], strides = [1, 1]} : vector<8x128xf32> to vector<8x32xf32>
    %262 = math.tanh %261 : vector<8x32xf32>
    %263 = vector.extract_strided_slice %260 {offsets = [0, 0], sizes = [8, 32], strides = [1, 1]} : vector<8x96xf32> to vector<8x32xf32>
    %264 = vector.extract_strided_slice %260 {offsets = [0, 32], sizes = [8, 32], strides = [1, 1]} : vector<8x96xf32> to vector<8x32xf32>
    %265 = vector.extract_strided_slice %260 {offsets = [0, 64], sizes = [8, 32], strides = [1, 1]} : vector<8x96xf32> to vector<8x32xf32>
    %266 = arith.mulf %264, %247 : vector<8x32xf32>
    %267 = arith.mulf %263, %262 : vector<8x32xf32>
    %268 = arith.addf %266, %267 : vector<8x32xf32>
    %269 = math.tanh %268 : vector<8x32xf32>
    %270 = arith.mulf %265, %269 : vector<8x32xf32>
    %271 = arith.truncf %270 : vector<8x32xf32> to vector<8x32xbf16>
    %272 = arith.index_cast %c0_i32_99 : i32 to index
    %c0_107 = arith.constant 0 : index
    %c0_108 = arith.constant 0 : index
    %273 = vector.load %arg5[%272, %c0_107, %c0_108] : memref<8x8x32xbf16, #tpu.memory_space<vmem>>, vector<1x8x32xbf16>
    %274 = vector.shape_cast %273 : vector<1x8x32xbf16> to vector<8x32xbf16>
    %275 = vector.shape_cast %271 : vector<8x32xbf16> to vector<1x8x32xbf16>
    tpu.vector_store %arg5[%272, %c0_107, %c0_108], %275 {strides = array<i32>} : memref<8x8x32xbf16, #tpu.memory_space<vmem>>, vector<1x8x32xbf16>,
    %c1_i32_109 = arith.constant 1 : i32
    %276 = arith.index_cast %c1_i32_109 : i32 to index
    %c0_110 = arith.constant 0 : index
    %c0_111 = arith.constant 0 : index
    %277 = vector.load %arg6[%276, %c0_110, %c0_111] : memref<8x8x128xf32, #tpu.memory_space<vmem>>, vector<1x8x128xf32>
    %278 = vector.shape_cast %277 : vector<1x8x128xf32> to vector<8x128xf32>
    %c1_112 = arith.constant 1 : index
    %c0_113 = arith.constant 0 : index
    %c0_114 = arith.constant 0 : index
    %279 = vector.load %arg3[%c1_112, %c0_113, %c0_114] : memref<2x32x128xbf16, #tpu.memory_space<vmem>>, vector<1x32x128xbf16>
    %280 = vector.shape_cast %279 : vector<1x32x128xbf16> to vector<32x128xbf16>
    %cst_115 = arith.constant dense<0.000000e+00> : vector<8x128xf32>
    %281 = tpu.matmul %271, %280, %cst_115 {dimension_numbers = #tpu.dot_dimension_numbers<[1], [0], [0], [1], [0, 0, 1, 1], [], []>} : vector<8x32xbf16>, vector<32x128xbf16>, vector<8x128xf32> -> vector<8x128xf32>
    %282 = arith.addf %278, %281 : vector<8x128xf32>
    %283 = vector.extract_strided_slice %282 {offsets = [0, 0], sizes = [8, 96], strides = [1, 1]} : vector<8x128xf32> to vector<8x96xf32>
    %284 = arith.negf %283 : vector<8x96xf32>
    %285 = math.exp %284 : vector<8x96xf32>
    %cst_116 = arith.constant 1.000000e+00 : f32
    %286 = vector.broadcast %cst_116 : f32 to vector<8x96xf32>
    %287 = arith.addf %286, %285 : vector<8x96xf32>
    %288 = arith.divf %286, %287 : vector<8x96xf32>
    %289 = vector.extract_strided_slice %282 {offsets = [0, 96], sizes = [8, 32], strides = [1, 1]} : vector<8x128xf32> to vector<8x32xf32>
    %290 = math.tanh %289 : vector<8x32xf32>
    %291 = vector.extract_strided_slice %288 {offsets = [0, 0], sizes = [8, 32], strides = [1, 1]} : vector<8x96xf32> to vector<8x32xf32>
    %292 = vector.extract_strided_slice %288 {offsets = [0, 32], sizes = [8, 32], strides = [1, 1]} : vector<8x96xf32> to vector<8x32xf32>
    %293 = vector.extract_strided_slice %288 {offsets = [0, 64], sizes = [8, 32], strides = [1, 1]} : vector<8x96xf32> to vector<8x32xf32>
    %294 = arith.mulf %292, %268 : vector<8x32xf32>
    %295 = arith.mulf %291, %290 : vector<8x32xf32>
    %296 = arith.addf %294, %295 : vector<8x32xf32>
    %297 = math.tanh %296 : vector<8x32xf32>
    %298 = arith.mulf %293, %297 : vector<8x32xf32>
    %299 = arith.truncf %298 : vector<8x32xf32> to vector<8x32xbf16>
    %300 = arith.index_cast %c1_i32_109 : i32 to index
    %c0_117 = arith.constant 0 : index
    %c0_118 = arith.constant 0 : index
    %301 = vector.load %arg5[%300, %c0_117, %c0_118] : memref<8x8x32xbf16, #tpu.memory_space<vmem>>, vector<1x8x32xbf16>
    %302 = vector.shape_cast %301 : vector<1x8x32xbf16> to vector<8x32xbf16>
    %303 = vector.shape_cast %299 : vector<8x32xbf16> to vector<1x8x32xbf16>
    tpu.vector_store %arg5[%300, %c0_117, %c0_118], %303 {strides = array<i32>} : memref<8x8x32xbf16, #tpu.memory_space<vmem>>, vector<1x8x32xbf16>,
    %c2_i32_119 = arith.constant 2 : i32
    %304 = arith.index_cast %c2_i32_119 : i32 to index
    %c0_120 = arith.constant 0 : index
    %c0_121 = arith.constant 0 : index
    %305 = vector.load %arg6[%304, %c0_120, %c0_121] : memref<8x8x128xf32, #tpu.memory_space<vmem>>, vector<1x8x128xf32>
    %306 = vector.shape_cast %305 : vector<1x8x128xf32> to vector<8x128xf32>
    %c1_122 = arith.constant 1 : index
    %c0_123 = arith.constant 0 : index
    %c0_124 = arith.constant 0 : index
    %307 = vector.load %arg3[%c1_122, %c0_123, %c0_124] : memref<2x32x128xbf16, #tpu.memory_space<vmem>>, vector<1x32x128xbf16>
    %308 = vector.shape_cast %307 : vector<1x32x128xbf16> to vector<32x128xbf16>
    %cst_125 = arith.constant dense<0.000000e+00> : vector<8x128xf32>
    %309 = tpu.matmul %299, %308, %cst_125 {dimension_numbers = #tpu.dot_dimension_numbers<[1], [0], [0], [1], [0, 0, 1, 1], [], []>} : vector<8x32xbf16>, vector<32x128xbf16>, vector<8x128xf32> -> vector<8x128xf32>
    %310 = arith.addf %306, %309 : vector<8x128xf32>
    %311 = vector.extract_strided_slice %310 {offsets = [0, 0], sizes = [8, 96], strides = [1, 1]} : vector<8x128xf32> to vector<8x96xf32>
    %312 = arith.negf %311 : vector<8x96xf32>
    %313 = math.exp %312 : vector<8x96xf32>
    %cst_126 = arith.constant 1.000000e+00 : f32
    %314 = vector.broadcast %cst_126 : f32 to vector<8x96xf32>
    %315 = arith.addf %314, %313 : vector<8x96xf32>
    %316 = arith.divf %314, %315 : vector<8x96xf32>
    %317 = vector.extract_strided_slice %310 {offsets = [0, 96], sizes = [8, 32], strides = [1, 1]} : vector<8x128xf32> to vector<8x32xf32>
    %318 = math.tanh %317 : vector<8x32xf32>
    %319 = vector.extract_strided_slice %316 {offsets = [0, 0], sizes = [8, 32], strides = [1, 1]} : vector<8x96xf32> to vector<8x32xf32>
    %320 = vector.extract_strided_slice %316 {offsets = [0, 32], sizes = [8, 32], strides = [1, 1]} : vector<8x96xf32> to vector<8x32xf32>
    %321 = vector.extract_strided_slice %316 {offsets = [0, 64], sizes = [8, 32], strides = [1, 1]} : vector<8x96xf32> to vector<8x32xf32>
    %322 = arith.mulf %320, %296 : vector<8x32xf32>
    %323 = arith.mulf %319, %318 : vector<8x32xf32>
    %324 = arith.addf %322, %323 : vector<8x32xf32>
    %325 = math.tanh %324 : vector<8x32xf32>
    %326 = arith.mulf %321, %325 : vector<8x32xf32>
    %327 = arith.truncf %326 : vector<8x32xf32> to vector<8x32xbf16>
    %328 = arith.index_cast %c2_i32_119 : i32 to index
    %c0_127 = arith.constant 0 : index
    %c0_128 = arith.constant 0 : index
    %329 = vector.load %arg5[%328, %c0_127, %c0_128] : memref<8x8x32xbf16, #tpu.memory_space<vmem>>, vector<1x8x32xbf16>
    %330 = vector.shape_cast %329 : vector<1x8x32xbf16> to vector<8x32xbf16>
    %331 = vector.shape_cast %327 : vector<8x32xbf16> to vector<1x8x32xbf16>
    tpu.vector_store %arg5[%328, %c0_127, %c0_128], %331 {strides = array<i32>} : memref<8x8x32xbf16, #tpu.memory_space<vmem>>, vector<1x8x32xbf16>,
    %c3_i32_129 = arith.constant 3 : i32
    %332 = arith.index_cast %c3_i32_129 : i32 to index
    %c0_130 = arith.constant 0 : index
    %c0_131 = arith.constant 0 : index
    %333 = vector.load %arg6[%332, %c0_130, %c0_131] : memref<8x8x128xf32, #tpu.memory_space<vmem>>, vector<1x8x128xf32>
    %334 = vector.shape_cast %333 : vector<1x8x128xf32> to vector<8x128xf32>
    %c1_132 = arith.constant 1 : index
    %c0_133 = arith.constant 0 : index
    %c0_134 = arith.constant 0 : index
    %335 = vector.load %arg3[%c1_132, %c0_133, %c0_134] : memref<2x32x128xbf16, #tpu.memory_space<vmem>>, vector<1x32x128xbf16>
    %336 = vector.shape_cast %335 : vector<1x32x128xbf16> to vector<32x128xbf16>
    %cst_135 = arith.constant dense<0.000000e+00> : vector<8x128xf32>
    %337 = tpu.matmul %327, %336, %cst_135 {dimension_numbers = #tpu.dot_dimension_numbers<[1], [0], [0], [1], [0, 0, 1, 1], [], []>} : vector<8x32xbf16>, vector<32x128xbf16>, vector<8x128xf32> -> vector<8x128xf32>
    %338 = arith.addf %334, %337 : vector<8x128xf32>
    %339 = vector.extract_strided_slice %338 {offsets = [0, 0], sizes = [8, 96], strides = [1, 1]} : vector<8x128xf32> to vector<8x96xf32>
    %340 = arith.negf %339 : vector<8x96xf32>
    %341 = math.exp %340 : vector<8x96xf32>
    %cst_136 = arith.constant 1.000000e+00 : f32
    %342 = vector.broadcast %cst_136 : f32 to vector<8x96xf32>
    %343 = arith.addf %342, %341 : vector<8x96xf32>
    %344 = arith.divf %342, %343 : vector<8x96xf32>
    %345 = vector.extract_strided_slice %338 {offsets = [0, 96], sizes = [8, 32], strides = [1, 1]} : vector<8x128xf32> to vector<8x32xf32>
    %346 = math.tanh %345 : vector<8x32xf32>
    %347 = vector.extract_strided_slice %344 {offsets = [0, 0], sizes = [8, 32], strides = [1, 1]} : vector<8x96xf32> to vector<8x32xf32>
    %348 = vector.extract_strided_slice %344 {offsets = [0, 32], sizes = [8, 32], strides = [1, 1]} : vector<8x96xf32> to vector<8x32xf32>
    %349 = vector.extract_strided_slice %344 {offsets = [0, 64], sizes = [8, 32], strides = [1, 1]} : vector<8x96xf32> to vector<8x32xf32>
    %350 = arith.mulf %348, %324 : vector<8x32xf32>
    %351 = arith.mulf %347, %346 : vector<8x32xf32>
    %352 = arith.addf %350, %351 : vector<8x32xf32>
    %353 = math.tanh %352 : vector<8x32xf32>
    %354 = arith.mulf %349, %353 : vector<8x32xf32>
    %355 = arith.truncf %354 : vector<8x32xf32> to vector<8x32xbf16>
    %356 = arith.index_cast %c3_i32_129 : i32 to index
    %c0_137 = arith.constant 0 : index
    %c0_138 = arith.constant 0 : index
    %357 = vector.load %arg5[%356, %c0_137, %c0_138] : memref<8x8x32xbf16, #tpu.memory_space<vmem>>, vector<1x8x32xbf16>
    %358 = vector.shape_cast %357 : vector<1x8x32xbf16> to vector<8x32xbf16>
    %359 = vector.shape_cast %355 : vector<8x32xbf16> to vector<1x8x32xbf16>
    tpu.vector_store %arg5[%356, %c0_137, %c0_138], %359 {strides = array<i32>} : memref<8x8x32xbf16, #tpu.memory_space<vmem>>, vector<1x8x32xbf16>,
    %c4_i32_139 = arith.constant 4 : i32
    %360 = arith.index_cast %c4_i32_139 : i32 to index
    %c0_140 = arith.constant 0 : index
    %c0_141 = arith.constant 0 : index
    %361 = vector.load %arg6[%360, %c0_140, %c0_141] : memref<8x8x128xf32, #tpu.memory_space<vmem>>, vector<1x8x128xf32>
    %362 = vector.shape_cast %361 : vector<1x8x128xf32> to vector<8x128xf32>
    %c1_142 = arith.constant 1 : index
    %c0_143 = arith.constant 0 : index
    %c0_144 = arith.constant 0 : index
    %363 = vector.load %arg3[%c1_142, %c0_143, %c0_144] : memref<2x32x128xbf16, #tpu.memory_space<vmem>>, vector<1x32x128xbf16>
    %364 = vector.shape_cast %363 : vector<1x32x128xbf16> to vector<32x128xbf16>
    %cst_145 = arith.constant dense<0.000000e+00> : vector<8x128xf32>
    %365 = tpu.matmul %355, %364, %cst_145 {dimension_numbers = #tpu.dot_dimension_numbers<[1], [0], [0], [1], [0, 0, 1, 1], [], []>} : vector<8x32xbf16>, vector<32x128xbf16>, vector<8x128xf32> -> vector<8x128xf32>
    %366 = arith.addf %362, %365 : vector<8x128xf32>
    %367 = vector.extract_strided_slice %366 {offsets = [0, 0], sizes = [8, 96], strides = [1, 1]} : vector<8x128xf32> to vector<8x96xf32>
    %368 = arith.negf %367 : vector<8x96xf32>
    %369 = math.exp %368 : vector<8x96xf32>
    %cst_146 = arith.constant 1.000000e+00 : f32
    %370 = vector.broadcast %cst_146 : f32 to vector<8x96xf32>
    %371 = arith.addf %370, %369 : vector<8x96xf32>
    %372 = arith.divf %370, %371 : vector<8x96xf32>
    %373 = vector.extract_strided_slice %366 {offsets = [0, 96], sizes = [8, 32], strides = [1, 1]} : vector<8x128xf32> to vector<8x32xf32>
    %374 = math.tanh %373 : vector<8x32xf32>
    %375 = vector.extract_strided_slice %372 {offsets = [0, 0], sizes = [8, 32], strides = [1, 1]} : vector<8x96xf32> to vector<8x32xf32>
    %376 = vector.extract_strided_slice %372 {offsets = [0, 32], sizes = [8, 32], strides = [1, 1]} : vector<8x96xf32> to vector<8x32xf32>
    %377 = vector.extract_strided_slice %372 {offsets = [0, 64], sizes = [8, 32], strides = [1, 1]} : vector<8x96xf32> to vector<8x32xf32>
    %378 = arith.mulf %376, %352 : vector<8x32xf32>
    %379 = arith.mulf %375, %374 : vector<8x32xf32>
    %380 = arith.addf %378, %379 : vector<8x32xf32>
    %381 = math.tanh %380 : vector<8x32xf32>
    %382 = arith.mulf %377, %381 : vector<8x32xf32>
    %383 = arith.truncf %382 : vector<8x32xf32> to vector<8x32xbf16>
    %384 = arith.index_cast %c4_i32_139 : i32 to index
    %c0_147 = arith.constant 0 : index
    %c0_148 = arith.constant 0 : index
    %385 = vector.load %arg5[%384, %c0_147, %c0_148] : memref<8x8x32xbf16, #tpu.memory_space<vmem>>, vector<1x8x32xbf16>
    %386 = vector.shape_cast %385 : vector<1x8x32xbf16> to vector<8x32xbf16>
    %387 = vector.shape_cast %383 : vector<8x32xbf16> to vector<1x8x32xbf16>
    tpu.vector_store %arg5[%384, %c0_147, %c0_148], %387 {strides = array<i32>} : memref<8x8x32xbf16, #tpu.memory_space<vmem>>, vector<1x8x32xbf16>,
    %c5_i32_149 = arith.constant 5 : i32
    %388 = arith.index_cast %c5_i32_149 : i32 to index
    %c0_150 = arith.constant 0 : index
    %c0_151 = arith.constant 0 : index
    %389 = vector.load %arg6[%388, %c0_150, %c0_151] : memref<8x8x128xf32, #tpu.memory_space<vmem>>, vector<1x8x128xf32>
    %390 = vector.shape_cast %389 : vector<1x8x128xf32> to vector<8x128xf32>
    %c1_152 = arith.constant 1 : index
    %c0_153 = arith.constant 0 : index
    %c0_154 = arith.constant 0 : index
    %391 = vector.load %arg3[%c1_152, %c0_153, %c0_154] : memref<2x32x128xbf16, #tpu.memory_space<vmem>>, vector<1x32x128xbf16>
    %392 = vector.shape_cast %391 : vector<1x32x128xbf16> to vector<32x128xbf16>
    %cst_155 = arith.constant dense<0.000000e+00> : vector<8x128xf32>
    %393 = tpu.matmul %383, %392, %cst_155 {dimension_numbers = #tpu.dot_dimension_numbers<[1], [0], [0], [1], [0, 0, 1, 1], [], []>} : vector<8x32xbf16>, vector<32x128xbf16>, vector<8x128xf32> -> vector<8x128xf32>
    %394 = arith.addf %390, %393 : vector<8x128xf32>
    %395 = vector.extract_strided_slice %394 {offsets = [0, 0], sizes = [8, 96], strides = [1, 1]} : vector<8x128xf32> to vector<8x96xf32>
    %396 = arith.negf %395 : vector<8x96xf32>
    %397 = math.exp %396 : vector<8x96xf32>
    %cst_156 = arith.constant 1.000000e+00 : f32
    %398 = vector.broadcast %cst_156 : f32 to vector<8x96xf32>
    %399 = arith.addf %398, %397 : vector<8x96xf32>
    %400 = arith.divf %398, %399 : vector<8x96xf32>
    %401 = vector.extract_strided_slice %394 {offsets = [0, 96], sizes = [8, 32], strides = [1, 1]} : vector<8x128xf32> to vector<8x32xf32>
    %402 = math.tanh %401 : vector<8x32xf32>
    %403 = vector.extract_strided_slice %400 {offsets = [0, 0], sizes = [8, 32], strides = [1, 1]} : vector<8x96xf32> to vector<8x32xf32>
    %404 = vector.extract_strided_slice %400 {offsets = [0, 32], sizes = [8, 32], strides = [1, 1]} : vector<8x96xf32> to vector<8x32xf32>
    %405 = vector.extract_strided_slice %400 {offsets = [0, 64], sizes = [8, 32], strides = [1, 1]} : vector<8x96xf32> to vector<8x32xf32>
    %406 = arith.mulf %404, %380 : vector<8x32xf32>
    %407 = arith.mulf %403, %402 : vector<8x32xf32>
    %408 = arith.addf %406, %407 : vector<8x32xf32>
    %409 = math.tanh %408 : vector<8x32xf32>
    %410 = arith.mulf %405, %409 : vector<8x32xf32>
    %411 = arith.truncf %410 : vector<8x32xf32> to vector<8x32xbf16>
    %412 = arith.index_cast %c5_i32_149 : i32 to index
    %c0_157 = arith.constant 0 : index
    %c0_158 = arith.constant 0 : index
    %413 = vector.load %arg5[%412, %c0_157, %c0_158] : memref<8x8x32xbf16, #tpu.memory_space<vmem>>, vector<1x8x32xbf16>
    %414 = vector.shape_cast %413 : vector<1x8x32xbf16> to vector<8x32xbf16>
    %415 = vector.shape_cast %411 : vector<8x32xbf16> to vector<1x8x32xbf16>
    tpu.vector_store %arg5[%412, %c0_157, %c0_158], %415 {strides = array<i32>} : memref<8x8x32xbf16, #tpu.memory_space<vmem>>, vector<1x8x32xbf16>,
    %c6_i32_159 = arith.constant 6 : i32
    %416 = arith.index_cast %c6_i32_159 : i32 to index
    %c0_160 = arith.constant 0 : index
    %c0_161 = arith.constant 0 : index
    %417 = vector.load %arg6[%416, %c0_160, %c0_161] : memref<8x8x128xf32, #tpu.memory_space<vmem>>, vector<1x8x128xf32>
    %418 = vector.shape_cast %417 : vector<1x8x128xf32> to vector<8x128xf32>
    %c1_162 = arith.constant 1 : index
    %c0_163 = arith.constant 0 : index
    %c0_164 = arith.constant 0 : index
    %419 = vector.load %arg3[%c1_162, %c0_163, %c0_164] : memref<2x32x128xbf16, #tpu.memory_space<vmem>>, vector<1x32x128xbf16>
    %420 = vector.shape_cast %419 : vector<1x32x128xbf16> to vector<32x128xbf16>
    %cst_165 = arith.constant dense<0.000000e+00> : vector<8x128xf32>
    %421 = tpu.matmul %411, %420, %cst_165 {dimension_numbers = #tpu.dot_dimension_numbers<[1], [0], [0], [1], [0, 0, 1, 1], [], []>} : vector<8x32xbf16>, vector<32x128xbf16>, vector<8x128xf32> -> vector<8x128xf32>
    %422 = arith.addf %418, %421 : vector<8x128xf32>
    %423 = vector.extract_strided_slice %422 {offsets = [0, 0], sizes = [8, 96], strides = [1, 1]} : vector<8x128xf32> to vector<8x96xf32>
    %424 = arith.negf %423 : vector<8x96xf32>
    %425 = math.exp %424 : vector<8x96xf32>
    %cst_166 = arith.constant 1.000000e+00 : f32
    %426 = vector.broadcast %cst_166 : f32 to vector<8x96xf32>
    %427 = arith.addf %426, %425 : vector<8x96xf32>
    %428 = arith.divf %426, %427 : vector<8x96xf32>
    %429 = vector.extract_strided_slice %422 {offsets = [0, 96], sizes = [8, 32], strides = [1, 1]} : vector<8x128xf32> to vector<8x32xf32>
    %430 = math.tanh %429 : vector<8x32xf32>
    %431 = vector.extract_strided_slice %428 {offsets = [0, 0], sizes = [8, 32], strides = [1, 1]} : vector<8x96xf32> to vector<8x32xf32>
    %432 = vector.extract_strided_slice %428 {offsets = [0, 32], sizes = [8, 32], strides = [1, 1]} : vector<8x96xf32> to vector<8x32xf32>
    %433 = vector.extract_strided_slice %428 {offsets = [0, 64], sizes = [8, 32], strides = [1, 1]} : vector<8x96xf32> to vector<8x32xf32>
    %434 = arith.mulf %432, %408 : vector<8x32xf32>
    %435 = arith.mulf %431, %430 : vector<8x32xf32>
    %436 = arith.addf %434, %435 : vector<8x32xf32>
    %437 = math.tanh %436 : vector<8x32xf32>
    %438 = arith.mulf %433, %437 : vector<8x32xf32>
    %439 = arith.truncf %438 : vector<8x32xf32> to vector<8x32xbf16>
    %440 = arith.index_cast %c6_i32_159 : i32 to index
    %c0_167 = arith.constant 0 : index
    %c0_168 = arith.constant 0 : index
    %441 = vector.load %arg5[%440, %c0_167, %c0_168] : memref<8x8x32xbf16, #tpu.memory_space<vmem>>, vector<1x8x32xbf16>
    %442 = vector.shape_cast %441 : vector<1x8x32xbf16> to vector<8x32xbf16>
    %443 = vector.shape_cast %439 : vector<8x32xbf16> to vector<1x8x32xbf16>
    tpu.vector_store %arg5[%440, %c0_167, %c0_168], %443 {strides = array<i32>} : memref<8x8x32xbf16, #tpu.memory_space<vmem>>, vector<1x8x32xbf16>,
    %c7_i32_169 = arith.constant 7 : i32
    %444 = arith.index_cast %c7_i32_169 : i32 to index
    %c0_170 = arith.constant 0 : index
    %c0_171 = arith.constant 0 : index
    %445 = vector.load %arg6[%444, %c0_170, %c0_171] : memref<8x8x128xf32, #tpu.memory_space<vmem>>, vector<1x8x128xf32>
    %446 = vector.shape_cast %445 : vector<1x8x128xf32> to vector<8x128xf32>
    %c1_172 = arith.constant 1 : index
    %c0_173 = arith.constant 0 : index
    %c0_174 = arith.constant 0 : index
    %447 = vector.load %arg3[%c1_172, %c0_173, %c0_174] : memref<2x32x128xbf16, #tpu.memory_space<vmem>>, vector<1x32x128xbf16>
    %448 = vector.shape_cast %447 : vector<1x32x128xbf16> to vector<32x128xbf16>
    %cst_175 = arith.constant dense<0.000000e+00> : vector<8x128xf32>
    %449 = tpu.matmul %439, %448, %cst_175 {dimension_numbers = #tpu.dot_dimension_numbers<[1], [0], [0], [1], [0, 0, 1, 1], [], []>} : vector<8x32xbf16>, vector<32x128xbf16>, vector<8x128xf32> -> vector<8x128xf32>
    %450 = arith.addf %446, %449 : vector<8x128xf32>
    %451 = vector.extract_strided_slice %450 {offsets = [0, 0], sizes = [8, 96], strides = [1, 1]} : vector<8x128xf32> to vector<8x96xf32>
    %452 = arith.negf %451 : vector<8x96xf32>
    %453 = math.exp %452 : vector<8x96xf32>
    %cst_176 = arith.constant 1.000000e+00 : f32
    %454 = vector.broadcast %cst_176 : f32 to vector<8x96xf32>
    %455 = arith.addf %454, %453 : vector<8x96xf32>
    %456 = arith.divf %454, %455 : vector<8x96xf32>
    %457 = vector.extract_strided_slice %450 {offsets = [0, 96], sizes = [8, 32], strides = [1, 1]} : vector<8x128xf32> to vector<8x32xf32>
    %458 = math.tanh %457 : vector<8x32xf32>
    %459 = vector.extract_strided_slice %456 {offsets = [0, 0], sizes = [8, 32], strides = [1, 1]} : vector<8x96xf32> to vector<8x32xf32>
    %460 = vector.extract_strided_slice %456 {offsets = [0, 32], sizes = [8, 32], strides = [1, 1]} : vector<8x96xf32> to vector<8x32xf32>
    %461 = vector.extract_strided_slice %456 {offsets = [0, 64], sizes = [8, 32], strides = [1, 1]} : vector<8x96xf32> to vector<8x32xf32>
    %462 = arith.mulf %460, %436 : vector<8x32xf32>
    %463 = arith.mulf %459, %458 : vector<8x32xf32>
    %464 = arith.addf %462, %463 : vector<8x32xf32>
    %465 = math.tanh %464 : vector<8x32xf32>
    %466 = arith.mulf %461, %465 : vector<8x32xf32>
    %467 = arith.truncf %466 : vector<8x32xf32> to vector<8x32xbf16>
    %468 = arith.index_cast %c7_i32_169 : i32 to index
    %c0_177 = arith.constant 0 : index
    %c0_178 = arith.constant 0 : index
    %469 = vector.load %arg5[%468, %c0_177, %c0_178] : memref<8x8x32xbf16, #tpu.memory_space<vmem>>, vector<1x8x32xbf16>
    %470 = vector.shape_cast %469 : vector<1x8x32xbf16> to vector<8x32xbf16>
    %471 = vector.shape_cast %467 : vector<8x32xbf16> to vector<1x8x32xbf16>
    tpu.vector_store %arg5[%468, %c0_177, %c0_178], %471 {strides = array<i32>} : memref<8x8x32xbf16, #tpu.memory_space<vmem>>, vector<1x8x32xbf16>,
    %c8_i32_179 = arith.constant 8 : i32
    return
  }
  func.func @transform_0(%arg0: i32) -> (i32, i32, i32) {
    %c0_i32 = arith.constant 0 : i32
    %c0_i32_0 = arith.constant 0 : i32
    %c0_i32_1 = arith.constant 0 : i32
    return %c0_i32, %arg0, %c0_i32_0 : i32, i32, i32
  }
  func.func @transform_1(%arg0: i32) -> (i32, i32, i32) {
    %c0_i32 = arith.constant 0 : i32
    %c0_i32_0 = arith.constant 0 : i32
    %c0_i32_1 = arith.constant 0 : i32
    %c0_i32_2 = arith.constant 0 : i32
    return %c0_i32, %c0_i32_0, %c0_i32_1 : i32, i32, i32
  }
  func.func @transform_2(%arg0: i32) -> (i32, i32, i32) {
    %c0_i32 = arith.constant 0 : i32
    %c0_i32_0 = arith.constant 0 : i32
    %c0_i32_1 = arith.constant 0 : i32
    %c0_i32_2 = arith.constant 0 : i32
    return %c0_i32, %c0_i32_0, %c0_i32_1 : i32, i32, i32
  }
  func.func @transform_3(%arg0: i32) -> (i32, i32, i32) {
    %c0_i32 = arith.constant 0 : i32
    %c0_i32_0 = arith.constant 0 : i32
    %c0_i32_1 = arith.constant 0 : i32
    %c0_i32_2 = arith.constant 0 : i32
    return %c0_i32, %c0_i32_0, %c0_i32_1 : i32, i32, i32
  }
  func.func @transform_4(%arg0: i32) -> (i32, i32, i32) {
    %c0_i32 = arith.constant 0 : i32
    %c0_i32_0 = arith.constant 0 : i32
    %c0_i32_1 = arith.constant 0 : i32
    return %c0_i32, %arg0, %c0_i32_0 : i32, i32, i32
  }
}

</mosaic_0001>

<bundles_post_ra>
// kernel: tpu_custom_call.1
= control target key start
LH: loop header
LB: loop body
LE: loop exit
PB: predicated region body
PF: predicated region fallthrough
CT: control target
= control target key end

     0   :  { %9 = vsyncpa [#allocation4], 0  ;;  %s2838_s0 = inlined_call_operand.hbm [shape: bf16[8,8,32], index: 0, kind: input, shape index: {}]   ;;  %s2839_s1 = inlined_call_operand.hbm [shape: bf16[2,32,128], index: 1, kind: input, shape index: {}]   ;;  %s2840_s2 = inlined_call_operand.hbm [shape: bf16[2,32,128], index: 2, kind: input, shape index: {}]   ;;  %s2841_s3 = inlined_call_operand.vmem [shape: f32[2,1,128], index: 3, kind: input, shape index: {}]   ;;  %s2842_s4 = inlined_call_operand.hbm [shape: bf16[8,8,32], index: 4, kind: output, shape index: {}]  }
   0x1   :  { %10 = vsyncpa [#allocation7], 0 }
   0x2   :  { %11 = vsyncpa [#allocation5], 0  ;;  %s2479_s15 = smov [#allocation6]   ;;  %s2480_s17 = smov [#allocation3]  }
   0x3   :  { %s29_s16 = sshll.u32 %s2479_s15, 4  ;;  %s17_s18 = sshll.u32 %s2480_s17, 4  ;;  %s30_s16 = int_to_ptr.vmem [resolvable:$true] %s29_s16  ;;  %s18_s18 = int_to_ptr.vmem [resolvable:$true] %s17_s18 }
   0x4   :  { %s2401_s19 = scalar_lea.vmem %s30_s16, 512  ;;  %p2406_p1 = scmp.lt.s32.totalorder %s30_s16, %s30_s16 }
   0x5   :  { %p2402_p0 = scmp.ne.s32.totalorder %s30_s16, %s2401_s19  ;;  %p2407_p2 = scmp.lt.s32.totalorder %s2401_s19, %s2401_s19 }
   0x7   :  { %p2408_p3 = por %p2407_p2, %p2406_p1 }
   0x9   :  { %p2409_p4 = pnand %p2408_p3, %p2402_p0 }
   0xb   :  { %2412 = shalt.err (!%p2409_p4)
}
   0xc   :  { %s2481_s20 = smov 64   ;;  %s2482_s21 = smov 4  }
   0xd   :  { %35 = dma.hbm_to_vmem [thread:$0]  %s2839_s1, 512, %s30_s16, [#allocation7], %s2481_s20, %s2481_s20, %s2482_s21  }
   0xe   :  { %s2421_s24 = scalar_lea.vmem %s18_s18, 512  ;;  %p2426_p6 = scmp.lt.s32.totalorder %s18_s18, %s18_s18 }
   0xf   :  { %p2422_p5 = scmp.ne.s32.totalorder %s18_s18, %s2421_s24  ;;  %p2427_p7 = scmp.lt.s32.totalorder %s2421_s24, %s2421_s24 }
  0x11   :  { %p2428_p8 = por %p2427_p7, %p2426_p6 }
  0x13   :  { %p2429_p9 = pnand %p2428_p8, %p2422_p5 }
  0x15   :  { %2432 = shalt.err (!%p2429_p9)
}
  0x16   :  { %23 = dma.hbm_to_vmem [thread:$0]  %s2838_s0, 512, %s18_s18, [#allocation4], %s2481_s20, %s2481_s20, %s2482_s21  }
  0x17   :  { %s2483_s27 = smov [#allocation8]  }
  0x18   :  { %s41_s28 = sshll.u32 %s2483_s27, 4  ;;  %s42_s28 = int_to_ptr.vmem [resolvable:$true] %s41_s28 }
  0x19   :  { %s2441_s29 = scalar_lea.vmem %s42_s28, 512  ;;  %p2446_p11 = scmp.lt.s32.totalorder %s42_s28, %s42_s28 }
  0x1a   :  { %p2442_p10 = scmp.ne.s32.totalorder %s42_s28, %s2441_s29  ;;  %p2447_p12 = scmp.lt.s32.totalorder %s2441_s29, %s2441_s29 }
  0x1c   :  { %p2448_p13 = por %p2447_p12, %p2446_p11 }
  0x1e   :  { %p2449_p0 = pnand %p2448_p13, %p2442_p10 }
  0x20   :  { %2452 = shalt.err (!%p2449_p0)
}
  0x21   :  { %47 = dma.hbm_to_vmem [thread:$0]  %s2840_s2, 512, %s42_s28, [#allocation7], %s2481_s20, %s2481_s20, %s2482_s21  }
  0x22   :  { %2473 = dma.done.wait [#allocation4], 512  }
  0x23   :  { %2474 = vsyncadd [#allocation4], 4294966784 }
  0x24   :  { %2475 = dma.done.wait [#allocation7], 1024  }
  0x25   :  { %2476 = vsyncadd [#allocation7], 4294966272  ;;  %v2484_v0 = vmov 0.0   ;;  %vm2485_vm0 = vmmov 0   ;;  %v2221_v1 = vld [vmem:[#allocation6 + $0x8] sm:$0xff]   ;;  %v2223_v3 = vld [vmem:[#allocation6] sm:$0xff]  }
  0x26   :  { %2071 = vmatprep.subr.bf16.mxu1 %v2484_v0  ;;  %2075 = vmatprep.mubr.msk.bf16.mxu1 %vm2485_vm0, %v2484_v0  ;;  %v2222_v2 = vld [vmem:[#allocation8 + $0x8] sm:$0xff]   ;;  %v2224_v4 = vld [vmem:[#allocation8] sm:$0xff]   ;;  %vm111_vm1 = vcmask 261120   ;;  %v2486_v7 = vmov 0   ;;  %s2487_s5 = smov 32   ;;  %v2230_v53 = vld [vmem:[#allocation3 + $0x10] sm:$0xff]  }
  0x27   :  { %2059 = vmatprep.subr.bf16.mxu0 %v2221_v1  ;;  %2072 = vmatpush3.bf16.msra.mxu1 %v2222_v2  ;;  %v2225_v5 = vld [vmem:[#allocation3] sm:$0xff]   ;;  %v2226_v6 = vld [vmem:[#allocation3 + $0x8] sm:$0xff]   ;;  %v2231_v54 = vld [vmem:[#allocation3 + $0x18] sm:$0xff]   ;;  %vm289_vm2 = vcmask 257024  }
  0x28   :  { %2060 = vmatpush3.bf16.msra.mxu0 %v2221_v1  ;;  %2073 = vmatprep.subr.bf16.mxu1 %v2484_v0  ;;  %v2548_v10 = vld [vmem:[%s2841_s3] ss:$0 sm:$0xff]  ;;  %v2227_v27 = vld [vmem:[#allocation8 + $0x8] sm:$0xff]  }
  0x29   :  { %2061 = vmatprep.subr.bf16.mxu0 %v2223_v3  ;;  %2063 = vmatprep.mubr.msk.bf16.mxu0 %vm111_vm1, %v2225_v5  ;;  %v2228_v28 = vld [vmem:[#allocation8] sm:$0xff]   ;;  %v2229_v52 = vld [vmem:[#allocation8 + $0x8] sm:$0xff]  }
  0x2a   :  { %v2232_v55 = vld [vmem:[#allocation8] sm:$0xff]  }
  0x2b   :  { %2074 = vmatpush3.bf16.msra.mxu1 %v2224_v4 }
  0x2c   :  { %2062 = vmatpush3.bf16.msra.mxu0 %v2223_v3  ;;  %2079 = vmatprep.subr.bf16.mxu1 %v2484_v0 }
  0x2d   :  { %2087 = vmatprep.subr.bf16.mxu0 %v2484_v0 }
  0x2e   :  { %2076 = vmatmul.mubr.bf16.vlgmr.msra.gmra.mxu1 %v2486_v7 }
  0x2f   :  { %2064 = vmatmul.mubr.msk.bf16.vlgmr.msra.gmra.mxu0 %vm111_vm1, %v2226_v6  ;;  %2083 = vmatprep.mubr.msk.bf16.mxu1 %vm2485_vm0, %v2484_v0 }
  0x30   :  { %2080 = vmatpush3.bf16.msra.mxu1 %v2227_v27  ;;  %2088 = vmatpush3.bf16.msra.mxu0 %v2229_v52 }
  0x31   :  { %2081 = vmatprep.subr.bf16.mxu1 %v2484_v0  ;;  %2067 = vmatprep.mubr.msk.bf16.mxu0 %vm111_vm1, %v2230_v53 }
  0x32   :  { %2089 = vmatprep.subr.bf16.mxu0 %v2484_v0 }
  0x34   :  { %2082 = vmatpush3.bf16.msra.mxu1 %v2228_v28  ;;  %2090 = vmatpush3.bf16.msra.mxu0 %v2232_v55 }
  0x35   :  { %2095 = vmatprep.subr.bf16.mxu1 %v2484_v0  ;;  %2103 = vmatprep.subr.bf16.mxu0 %v2484_v0 }
  0x37   :  { %2068 = vmatmul.mubr.msk.bf16.gmra.mxu0 %vm111_vm1, %v2231_v54 }
  0x38   :  { %2091 = vmatprep.mubr.msk.bf16.mxu0 %vm2485_vm0, %v2484_v0 }
  0xee   :  { %v251_v8 = vpop.f32.mrf.mxu1 }
  0xef   :  { %v2543_v9 = vpop.f32.mrf.mxu0 }
  0xf0   :  { %v2077_v11 = vpop.f32.mrf.mxu1  ;;  %v167_v2 = vadd.f32 %v2543_v9, %v2548_v10 }
  0xf1   :  { %v158_v12 = vpop.f32.mrf.mxu0 }
  0xf2   :  { %v159_v13 = vadd.f32 %v2548_v10, %v158_v12  ;;  %v254_v14 = vpop.f32.mrf.mxu1 }
  0xf3   :  { %v2563_v34 = vpop.f32.mrf.mxu0 }
  0xf4   :  { %v257_v15 = vadd.f32 %v251_v8, %v159_v13  ;;  %v2078_v16 = vpop.f32.mrf.mxu1  ;;  %v170_v27 = vadd.f32 %v2563_v34, %v2548_v10 }
  0xf5   :  { %v161_v35 = vpop.f32.mrf.mxu0 }
  0xf6   :  { %2265 = vtanh.f32 %v257_v15  ;;  %v1895_v18 = vmul.f32 -1.442695, %v257_v15  ;;  %v162_v36 = vadd.f32 %v2548_v10, %v161_v35 }
  0xf7   :  { %v2582_v61 = vpop.f32.mrf.mxu0 }
  0xf8   :  { %2267 = vpow2.f32 %v1895_v18 }
  0xf9   :  { %v2584_v62 = vpop.f32.mrf.mxu0 }
  0xfb   :  { %v2586_v63 = vpop.f32.mrf.mxu0 }
  0xfd   :  { %v2588_v1 = vpop.f32.mrf.mxu0 }
 0x103   :  { %v2266_v17 = vpop.eup %2265 }
 0x104   :  { %267 = vrot.lane.b32.xlu0 %v2266_v17, %s2487_s5 }
 0x105   :  { %v2268_v19 = vpop.eup %2267 }
 0x106   :  { %v261_v20 = vadd.f32 1.0, %v2268_v19 }
 0x108   :  { %2269 = vrcp.f32 %v261_v20  ;;  %v2233_v20 = vld [vmem:[#allocation8 + $0x8] sm:$0xff]  }
 0x115   :  { %v2270_v21 = vpop.eup %2269 }
 0x116   :  { %v265_v24 = vmul.f32 0.0, %v2270_v21 }
 0x176   :  { %v268_v22 = vpop.permute.xlu0 %267 }
 0x177   :  { %v270_v23 = vmul.f32 %v2270_v21, %v268_v22 }
 0x179   :  { %272 = vrot.lane.b32.xlu0 %v270_v23, %s2487_s5 }
 0x1eb   :  { %v273_v25 = vpop.permute.xlu0 %272 }
 0x1ec   :  { %v275_v26 = vadd.f32 %v273_v25, %v265_v24 }
 0x1ee   :  { %2271 = vtanh.f32 %v275_v26 }
 0x1fb   :  { %v2272_v29 = vpop.eup %2271 }
 0x1fc   :  { %278 = vrot.lane.b32.xlu1 %v2272_v29, %s2487_s5 }
 0x26e   :  { %v279_v30 = vpop.permute.xlu1 %278 }
 0x26f   :  { %v281_v31 = vmul.f32 %v2270_v21, %v279_v30  ;;  %v2234_v21 = vld [vmem:[#allocation8] sm:$0xff]  }
 0x271   :  { %v2556_v32 = vpack.c.bf16 %v281_v31, %v281_v31 }
 0x273   :  { %297 = vrot.lane.b32.xlu1 %v2556_v32, %s2481_s20 }
 0x2e5   :  { %v298_v33 = vpop.permute.xlu1 %297 }
 0x2e6   :  { %2084 = vmatmul.mubr.msk.bf16.vlgmr.msra.gmra.mxu1 %vm111_vm1, %v298_v33 }
 0x2e7   :  { %2099 = vmatprep.mubr.msk.bf16.mxu1 %vm2485_vm0, %v2484_v0  ;;  %2096 = vmatpush3.bf16.msra.mxu1 %v2233_v20 }
 0x2e8   :  { %2097 = vmatprep.subr.bf16.mxu1 %v2484_v0 }
 0x2eb   :  { %2098 = vmatpush3.bf16.msra.mxu1 %v2234_v21 }
 0x2ec   :  { %2111 = vmatprep.subr.bf16.mxu1 %v2484_v0 }
 0x3a6   :  { %v348_v37 = vpop.f32.mrf.mxu1 }
 0x3a7   :  { %v354_v38 = vadd.f32 %v348_v37, %v162_v36 }
 0x3a8   :  { %v2085_v39 = vpop.f32.mrf.mxu1 }
 0x3a9   :  { %2273 = vtanh.f32 %v354_v38  ;;  %v1900_v43 = vmul.f32 -1.442695, %v354_v38 }
 0x3aa   :  { %v351_v40 = vpop.f32.mrf.mxu1 }
 0x3ab   :  { %2275 = vpow2.f32 %v1900_v43 }
 0x3ac   :  { %v2086_v41 = vpop.f32.mrf.mxu1 }
 0x3b6   :  { %v2274_v42 = vpop.eup %2273 }
 0x3b7   :  { %364 = vrot.lane.b32.xlu0 %v2274_v42, %s2487_s5 }
 0x3b8   :  { %v2276_v44 = vpop.eup %2275 }
 0x3b9   :  { %v358_v45 = vadd.f32 1.0, %v2276_v44  ;;  %v2235_v44 = vld [vmem:[#allocation8 + $0x8] sm:$0xff]  }
 0x3bb   :  { %2277 = vrcp.f32 %v358_v45  ;;  %v2236_v45 = vld [vmem:[#allocation8] sm:$0xff]  }
 0x3c8   :  { %v2278_v46 = vpop.eup %2277 }
 0x3c9   :  { %v362_v49 = vmul.f32 %v2278_v46, %v275_v26 }
 0x429   :  { %v365_v47 = vpop.permute.xlu0 %364 }
 0x42a   :  { %v367_v48 = vmul.f32 %v2278_v46, %v365_v47 }
 0x42c   :  { %369 = vrot.lane.b32.xlu1 %v367_v48, %s2487_s5 }
 0x49e   :  { %v370_v50 = vpop.permute.xlu1 %369 }
 0x49f   :  { %v372_v51 = vadd.f32 %v370_v50, %v362_v49 }
 0x4a1   :  { %2279 = vtanh.f32 %v372_v51 }
 0x4ae   :  { %v2280_v56 = vpop.eup %2279 }
 0x4af   :  { %375 = vrot.lane.b32.xlu0 %v2280_v56, %s2487_s5 }
 0x521   :  { %v376_v57 = vpop.permute.xlu0 %375 }
 0x522   :  { %v378_v58 = vmul.f32 %v2278_v46, %v376_v57 }
 0x524   :  { %v2575_v59 = vpack.c.bf16 %v378_v58, %v378_v58 }
 0x526   :  { %394 = vrot.lane.b32.xlu1 %v2575_v59, %s2481_s20 }
 0x598   :  { %v395_v60 = vpop.permute.xlu1 %394 }
 0x599   :  { %2092 = vmatmul.mubr.msk.bf16.vlgmr.msra.gmra.mxu0 %vm111_vm1, %v395_v60 }
 0x59a   :  { %2107 = vmatprep.mubr.msk.bf16.mxu0 %vm2485_vm0, %v2484_v0  ;;  %2104 = vmatpush3.bf16.msra.mxu0 %v2235_v44 }
 0x59b   :  { %2105 = vmatprep.subr.bf16.mxu0 %v2484_v0 }
 0x59e   :  { %2106 = vmatpush3.bf16.msra.mxu0 %v2236_v45 }
 0x59f   :  { %2119 = vmatprep.subr.bf16.mxu0 %v2484_v0 }
 0x659   :  { %v445_v3 = vpop.f32.mrf.mxu0 }
 0x65a   :  { %v451_v4 = vadd.f32 %v445_v3, %v167_v2 }
 0x65b   :  { %v2093_v5 = vpop.f32.mrf.mxu0 }
 0x65c   :  { %2281 = vtanh.f32 %v451_v4  ;;  %v1905_v12 = vmul.f32 -1.442695, %v451_v4 }
 0x65d   :  { %v448_v6 = vpop.f32.mrf.mxu0 }
 0x65e   :  { %2283 = vpow2.f32 %v1905_v12  ;;  %v2238_v12 = vld [vmem:[#allocation8] sm:$0xff]  }
 0x65f   :  { %v2094_v8 = vpop.f32.mrf.mxu0 }
 0x669   :  { %v2282_v11 = vpop.eup %2281 }
 0x66a   :  { %461 = vrot.lane.b32.xlu0 %v2282_v11, %s2487_s5  ;;  %v2237_v11 = vld [vmem:[#allocation8 + $0x8] sm:$0xff]  }
 0x66b   :  { %v2284_v13 = vpop.eup %2283 }
 0x66c   :  { %v455_v14 = vadd.f32 1.0, %v2284_v13 }
 0x66e   :  { %2285 = vrcp.f32 %v455_v14 }
 0x67b   :  { %v2286_v15 = vpop.eup %2285 }
 0x67c   :  { %v459_v9 = vmul.f32 %v2286_v15, %v372_v51  ;;  %v175_v51 = vadd.f32 %v2548_v10, %v2584_v62 }
 0x6dc   :  { %v462_v16 = vpop.permute.xlu0 %461 }
 0x6dd   :  { %v464_v17 = vmul.f32 %v2286_v15, %v462_v16 }
 0x6df   :  { %466 = vrot.lane.b32.xlu1 %v464_v17, %s2487_s5 }
 0x751   :  { %v467_v18 = vpop.permute.xlu1 %466 }
 0x752   :  { %v469_v19 = vadd.f32 %v467_v18, %v459_v9  ;;  %v178_v9 = vadd.f32 %v2548_v10, %v2588_v1 }
 0x754   :  { %2287 = vtanh.f32 %v469_v19 }
 0x761   :  { %v2288_v22 = vpop.eup %2287 }
 0x762   :  { %472 = vrot.lane.b32.xlu0 %v2288_v22, %s2487_s5 }
 0x7d4   :  { %v473_v23 = vpop.permute.xlu0 %472 }
 0x7d5   :  { %v475_v24 = vmul.f32 %v2286_v15, %v473_v23 }
 0x7d7   :  { %v2597_v25 = vpack.c.bf16 %v475_v24, %v475_v24 }
 0x7d9   :  { %491 = vrot.lane.b32.xlu1 %v2597_v25, %s2481_s20 }
 0x84b   :  { %v492_v26 = vpop.permute.xlu1 %491 }
 0x84c   :  { %2100 = vmatmul.mubr.msk.bf16.vlgmr.msra.gmra.mxu1 %vm111_vm1, %v492_v26 }
 0x84d   :  { %2115 = vmatprep.mubr.msk.bf16.mxu1 %vm2485_vm0, %v2484_v0  ;;  %2112 = vmatpush3.bf16.msra.mxu1 %v2237_v11  ;;  %v2247_v11 = vld [vmem:[#allocation8 + $0x18] sm:$0xff]  }
 0x84e   :  { %2113 = vmatprep.subr.bf16.mxu1 %v2484_v0 }
 0x851   :  { %2114 = vmatpush3.bf16.msra.mxu1 %v2238_v12 }
 0x852   :  { %2127 = vmatprep.subr.bf16.mxu1 %v2484_v0 }
 0x90c   :  { %v542_v28 = vpop.f32.mrf.mxu1 }
 0x90d   :  { %v548_v29 = vadd.f32 %v542_v28, %v170_v27 }
 0x90e   :  { %v2101_v30 = vpop.f32.mrf.mxu1 }
 0x90f   :  { %2289 = vtanh.f32 %v548_v29  ;;  %v1910_v36 = vmul.f32 -1.442695, %v548_v29 }
 0x910   :  { %v545_v31 = vpop.f32.mrf.mxu1 }
 0x911   :  { %2291 = vpow2.f32 %v1910_v36  ;;  %v2240_v36 = vld [vmem:[#allocation8] sm:$0xff]  }
 0x912   :  { %v2102_v33 = vpop.f32.mrf.mxu1 }
 0x91c   :  { %v2290_v35 = vpop.eup %2289 }
 0x91d   :  { %558 = vrot.lane.b32.xlu0 %v2290_v35, %s2487_s5  ;;  %v2239_v35 = vld [vmem:[#allocation8 + $0x8] sm:$0xff]  }
 0x91e   :  { %v2292_v37 = vpop.eup %2291 }
 0x91f   :  { %v552_v38 = vadd.f32 1.0, %v2292_v37 }
 0x921   :  { %2293 = vrcp.f32 %v552_v38 }
 0x92e   :  { %v2294_v39 = vpop.eup %2293 }
 0x92f   :  { %v556_v34 = vmul.f32 %v2294_v39, %v469_v19 }
 0x98f   :  { %v559_v40 = vpop.permute.xlu0 %558 }
 0x990   :  { %v561_v41 = vmul.f32 %v2294_v39, %v559_v40 }
 0x992   :  { %563 = vrot.lane.b32.xlu1 %v561_v41, %s2487_s5 }
 0xa04   :  { %v564_v42 = vpop.permute.xlu1 %563 }
 0xa05   :  { %v566_v43 = vadd.f32 %v564_v42, %v556_v34  ;;  %v183_v34 = vadd.f32 %v2582_v61, %v2548_v10 }
 0xa07   :  { %2295 = vtanh.f32 %v566_v43 }
 0xa14   :  { %v2296_v46 = vpop.eup %2295 }
 0xa15   :  { %569 = vrot.lane.b32.xlu0 %v2296_v46, %s2487_s5 }
 0xa87   :  { %v570_v47 = vpop.permute.xlu0 %569 }
 0xa88   :  { %v572_v48 = vmul.f32 %v2294_v39, %v570_v47 }
 0xa8a   :  { %v2611_v49 = vpack.c.bf16 %v572_v48, %v572_v48 }
 0xa8c   :  { %588 = vrot.lane.b32.xlu1 %v2611_v49, %s2481_s20 }
 0xafe   :  { %v589_v50 = vpop.permute.xlu1 %588 }
 0xaff   :  { %2108 = vmatmul.mubr.msk.bf16.vlgmr.msra.gmra.mxu0 %vm111_vm1, %v589_v50 }
 0xb00   :  { %2123 = vmatprep.mubr.msk.bf16.mxu0 %vm2485_vm0, %v2484_v0  ;;  %2120 = vmatpush3.bf16.msra.mxu0 %v2239_v35 }
 0xb01   :  { %2121 = vmatprep.subr.bf16.mxu0 %v2484_v0 }
 0xb04   :  { %2122 = vmatpush3.bf16.msra.mxu0 %v2240_v36 }
 0xbbf   :  { %v639_v52 = vpop.f32.mrf.mxu0 }
 0xbc0   :  { %v645_v53 = vadd.f32 %v639_v52, %v175_v51 }
 0xbc1   :  { %v2109_v54 = vpop.f32.mrf.mxu0 }
 0xbc2   :  { %2297 = vtanh.f32 %v645_v53  ;;  %v1915_v58 = vmul.f32 -1.442695, %v645_v53 }
 0xbc3   :  { %v642_v55 = vpop.f32.mrf.mxu0 }
 0xbc4   :  { %2299 = vpow2.f32 %v1915_v58 }
 0xbc5   :  { %v2110_v56 = vpop.f32.mrf.mxu0 }
 0xbcf   :  { %v2298_v57 = vpop.eup %2297 }
 0xbd0   :  { %655 = vrot.lane.b32.xlu0 %v2298_v57, %s2487_s5 }
 0xbd1   :  { %v2300_v60 = vpop.eup %2299 }
 0xbd2   :  { %v649_v2 = vadd.f32 1.0, %v2300_v60  ;;  %v2241_v60 = vld [vmem:[#allocation6 + $0x18] sm:$0xff]  }
 0xbd3   :  { %2135 = vmatprep.subr.bf16.mxu0 %v2241_v60 }
 0xbd4   :  { %2301 = vrcp.f32 %v649_v2  ;;  %v2242_v2 = vld [vmem:[#allocation6 + $0x10] sm:$0xff]  }
 0xbe1   :  { %v2302_v3 = vpop.eup %2301 }
 0xbe2   :  { %v653_v62 = vmul.f32 %v2302_v3, %v566_v43 }
 0xc42   :  { %v656_v4 = vpop.permute.xlu0 %655 }
 0xc43   :  { %v658_v5 = vmul.f32 %v2302_v3, %v656_v4 }
 0xc45   :  { %660 = vrot.lane.b32.xlu1 %v658_v5, %s2487_s5 }
 0xcb7   :  { %v661_v6 = vpop.permute.xlu1 %660 }
 0xcb8   :  { %v663_v8 = vadd.f32 %v661_v6, %v653_v62 }
 0xcba   :  { %2303 = vtanh.f32 %v663_v8 }
 0xcc7   :  { %v2304_v13 = vpop.eup %2303 }
 0xcc8   :  { %666 = vrot.lane.b32.xlu0 %v2304_v13, %s2487_s5  ;;  %v2248_v13 = vld [vmem:[#allocation8 + $0x10] sm:$0xff]  }
 0xd3a   :  { %v667_v14 = vpop.permute.xlu0 %666 }
 0xd3b   :  { %v669_v15 = vmul.f32 %v2302_v3, %v667_v14  ;;  %v2246_v3 = vld [vmem:[#allocation8] sm:$0xff]   ;;  %v186_v14 = vadd.f32 %v2586_v63, %v2548_v10 }
 0xd3d   :  { %v2625_v16 = vpack.c.bf16 %v669_v15, %v669_v15 }
 0xd3f   :  { %685 = vrot.lane.b32.xlu1 %v2625_v16, %s2481_s20 }
 0xdb1   :  { %v686_v17 = vpop.permute.xlu1 %685 }
 0xdb2   :  { %2116 = vmatmul.mubr.msk.bf16.vlgmr.msra.gmra.mxu1 %vm111_vm1, %v686_v17 }
 0xdb3   :  { %2131 = vmatprep.mubr.msk.bf16.mxu1 %vm2485_vm0, %v2484_v0 }
 0xe72   :  { %v736_v18 = vpop.f32.mrf.mxu1 }
 0xe73   :  { %v742_v19 = vadd.f32 %v736_v18, %v178_v9 }
 0xe74   :  { %v2117_v20 = vpop.f32.mrf.mxu1 }
 0xe75   :  { %2305 = vtanh.f32 %v742_v19  ;;  %v1920_v24 = vmul.f32 -1.442695, %v742_v19 }
 0xe76   :  { %v739_v21 = vpop.f32.mrf.mxu1 }
 0xe77   :  { %2307 = vpow2.f32 %v1920_v24  ;;  %v2687_v21 = vld [vmem:[%s2841_s3 + $0x1] ss:$0 sm:$0xff]  ;;  %s2488_s3 = smov [#allocation9]  }
 0xe78   :  { %v2118_v22 = vpop.f32.mrf.mxu1  ;;  %s1869_s8 = sshll.u32 %s2488_s3, 4  ;;  %s1870_s8 = int_to_ptr.vmem [resolvable:$true] %s1869_s8 }
 0xe79   :  { %s2453_s9 = scalar_lea.vmem %s1870_s8, 512  ;;  %p2458_p2 = scmp.lt.s32.totalorder %s1870_s8, %s1870_s8 }
 0xe7a   :  { %p2454_p1 = scmp.ne.s32.totalorder %s1870_s8, %s2453_s9  ;;  %p2459_p3 = scmp.lt.s32.totalorder %s2453_s9, %s2453_s9 }
 0xe7c   :  { %p2460_p4 = por %p2459_p3, %p2458_p2 }
 0xe7e   :  { %p2461_p5 = pnand %p2460_p4, %p2454_p1 }
 0xe82   :  { %v2306_v23 = vpop.eup %2305 }
 0xe83   :  { %752 = vrot.lane.b32.xlu0 %v2306_v23, %s2487_s5 }
 0xe84   :  { %v2308_v26 = vpop.eup %2307 }
 0xe85   :  { %v746_v27 = vadd.f32 1.0, %v2308_v26 }
 0xe87   :  { %2309 = vrcp.f32 %v746_v27 }
 0xe94   :  { %v2310_v28 = vpop.eup %2309 }
 0xe95   :  { %v750_v1 = vmul.f32 %v2310_v28, %v663_v8 }
 0xef5   :  { %v753_v29 = vpop.permute.xlu0 %752 }
 0xef6   :  { %v755_v30 = vmul.f32 %v2310_v28, %v753_v29 }
 0xef8   :  { %757 = vrot.lane.b32.xlu1 %v755_v30, %s2487_s5 }
 0xf6a   :  { %v758_v31 = vpop.permute.xlu1 %757 }
 0xf6b   :  { %v760_v33 = vadd.f32 %v758_v31, %v750_v1 }
 0xf6d   :  { %2311 = vtanh.f32 %v760_v33 }
 0xf7a   :  { %v2312_v37 = vpop.eup %2311 }
 0xf7b   :  { %763 = vrot.lane.b32.xlu0 %v2312_v37, %s2487_s5 }
 0xfed   :  { %v764_v38 = vpop.permute.xlu0 %763 }
 0xfee   :  { %v766_v39 = vmul.f32 %v2310_v28, %v764_v38  ;;  %v2249_v38 = vld [vmem:[#allocation8 + $0x18] sm:$0xff]  }
 0xff0   :  { %v2638_v40 = vpack.c.bf16 %v766_v39, %v766_v39  ;;  %v2250_v39 = vld [vmem:[#allocation8 + $0x10] sm:$0xff]  }
 0xff2   :  { %782 = vrot.lane.b32.xlu1 %v2638_v40, %s2481_s20 }
0x1064   :  { %v783_v41 = vpop.permute.xlu1 %782 }
0x1065   :  { %2124 = vmatmul.mubr.msk.bf16.vlgmr.msra.gmra.mxu0 %vm111_vm1, %v783_v41 }
0x1066   :  { %2136 = vmatpush3.bf16.msra.mxu0 %v2241_v60 }
0x1067   :  { %2137 = vmatprep.subr.bf16.mxu0 %v2242_v2 }
0x106a   :  { %2138 = vmatpush3.bf16.msra.mxu0 %v2242_v2 }
0x106b   :  { %2163 = vmatprep.subr.bf16.mxu0 %v2484_v0 }
0x1125   :  { %v833_v42 = vpop.f32.mrf.mxu0 }
0x1126   :  { %v839_v43 = vadd.f32 %v833_v42, %v183_v34 }
0x1127   :  { %v2125_v44 = vpop.f32.mrf.mxu0 }
0x1128   :  { %2313 = vtanh.f32 %v839_v43  ;;  %v1925_v48 = vmul.f32 -1.442695, %v839_v43 }
0x1129   :  { %v836_v45 = vpop.f32.mrf.mxu0 }
0x112a   :  { %2315 = vpow2.f32 %v1925_v48 }
0x112b   :  { %v2126_v46 = vpop.f32.mrf.mxu0 }
0x1135   :  { %v2314_v47 = vpop.eup %2313 }
0x1136   :  { %849 = vrot.lane.b32.xlu0 %v2314_v47, %s2487_s5 }
0x1137   :  { %v2316_v50 = vpop.eup %2315 }
0x1138   :  { %v843_v51 = vadd.f32 1.0, %v2316_v50 }
0x113a   :  { %2317 = vrcp.f32 %v843_v51 }
0x1147   :  { %v2318_v52 = vpop.eup %2317 }
0x1148   :  { %v847_v61 = vmul.f32 %v2318_v52, %v760_v33 }
0x11a8   :  { %v850_v53 = vpop.permute.xlu0 %849 }
0x11a9   :  { %v852_v54 = vmul.f32 %v2318_v52, %v850_v53 }
0x11ab   :  { %854 = vrot.lane.b32.xlu1 %v852_v54, %s2487_s5 }
0x11af   :  { %286 = vrot.lane.b32.xlu1 %v2556_v32, %s2481_s20 }
0x11b3   :  { %480 = vrot.lane.b32.xlu1 %v2597_v25, %s2481_s20  ;;  %v2245_v25 = vld [vmem:[#allocation8 + $0x8] sm:$0xff]  }
0x11b4   :  { %2128 = vmatpush3.bf16.msra.mxu1 %v2245_v25 }
0x11b5   :  { %2129 = vmatprep.subr.bf16.mxu1 %v2484_v0 }
0x11b8   :  { %2130 = vmatpush3.bf16.msra.mxu1 %v2246_v3 }
0x11b9   :  { %2147 = vmatprep.subr.bf16.mxu1 %v2484_v0 }
0x121d   :  { %v855_v55 = vpop.permute.xlu1 %854 }
0x121e   :  { %v2651_v56 = vadd.f32 %v855_v55, %v847_v61 }
0x1220   :  { %2319 = vtanh.f32 %v2651_v56 }
0x1221   :  { %v287_v57 = vpop.permute.xlu1 %286 }
0x1222   :  { %290 = vst.msk [vmem:[#allocation9] sm:$0xf] %vm289_vm2, %v287_v57 }
0x1225   :  { %v481_v58 = vpop.permute.xlu1 %480 }
0x1226   :  { %484 = vst.msk [vmem:[#allocation9 + $0x8] sm:$0xf] %vm289_vm2, %v481_v58 }
0x122d   :  { %v2320_v32 = vpop.eup %2319 }
0x122e   :  { %860 = vrot.lane.b32.xlu0 %v2320_v32, %s2487_s5 }
0x1232   :  { %383 = vrot.lane.b32.xlu0 %v2575_v59, %s2481_s20 }
0x1236   :  { %577 = vrot.lane.b32.xlu0 %v2611_v49, %s2481_s20 }
0x12a0   :  { %v861_v4 = vpop.permute.xlu0 %860 }
0x12a1   :  { %v863_v5 = vmul.f32 %v2318_v52, %v861_v4 }
0x12a3   :  { %v2664_v62 = vpack.c.bf16 %v863_v5, %v863_v5 }
0x12a4   :  { %v384_v6 = vpop.permute.xlu0 %383 }
0x12a5   :  { %387 = vst.msk [vmem:[#allocation9 + $0x4] sm:$0xf] %vm289_vm2, %v384_v6  ;;  %879 = vrot.lane.b32.xlu1 %v2664_v62, %s2481_s20 }
0x12a8   :  { %v578_v59 = vpop.permute.xlu0 %577 }
0x12a9   :  { %581 = vst.msk [vmem:[#allocation9 + $0xc] sm:$0xf] %vm289_vm2, %v578_v59 }
0x12ac   :  { %v2243_v8 = vld [vmem:[#allocation9] sm:$0xff]  }
0x12ad   :  { %2139 = vmatprep.mubr.msk.bf16.mxu0 %vm111_vm1, %v2243_v8 }
0x12b0   :  { %v2244_v49 = vld [vmem:[#allocation9 + $0x8] sm:$0xff]  }
0x12b1   :  { %2140 = vmatmul.mubr.msk.bf16.vlgmr.msra.gmra.mxu0 %vm111_vm1, %v2244_v49 }
0x1317   :  { %v880_v12 = vpop.permute.xlu1 %879 }
0x1318   :  { %2132 = vmatmul.mubr.msk.bf16.vlgmr.msra.gmra.mxu1 %vm111_vm1, %v880_v12 }
0x1319   :  { %2148 = vmatpush3.bf16.msra.mxu1 %v2247_v11  ;;  %2151 = vmatprep.mubr.msk.bf16.mxu1 %vm2485_vm0, %v2484_v0 }
0x131a   :  { %2149 = vmatprep.subr.bf16.mxu1 %v2484_v0 }
0x131d   :  { %2150 = vmatpush3.bf16.msra.mxu1 %v2248_v13 }
0x131e   :  { %2155 = vmatprep.subr.bf16.mxu1 %v2484_v0 }
0x1320   :  { %2152 = vmatmul.mubr.bf16.vlgmr.msra.gmra.mxu1 %v2486_v7 }
0x1321   :  { %2159 = vmatprep.mubr.msk.bf16.mxu1 %vm2485_vm0, %v2484_v0  ;;  %2156 = vmatpush3.bf16.msra.mxu1 %v2249_v38 }
0x1322   :  { %2157 = vmatprep.subr.bf16.mxu1 %v2484_v0 }
0x1325   :  { %2158 = vmatpush3.bf16.msra.mxu1 %v2250_v39 }
0x1326   :  { %2171 = vmatprep.subr.bf16.mxu1 %v2484_v0 }
0x1371   :  { %v2682_v15 = vpop.f32.mrf.mxu0 }
0x1373   :  { %v1069_v19 = vpop.f32.mrf.mxu0 }
0x1374   :  { %v1070_v7 = vadd.f32 %v2687_v21, %v1069_v19  ;;  %v2253_v19 = vld [vmem:[#allocation8 + $0x18] sm:$0xff]  }
0x1375   :  { %v2712_v60 = vpop.f32.mrf.mxu0  ;;  %2164 = vmatpush3.bf16.msra.mxu0 %v2253_v19 }
0x1376   :  { %2165 = vmatprep.subr.bf16.mxu0 %v2484_v0 }
0x1377   :  { %v1072_v2 = vpop.f32.mrf.mxu0 }
0x1378   :  { %v1073_v32 = vadd.f32 %v2687_v21, %v1072_v2 }
0x13d8   :  { %v930_v17 = vpop.f32.mrf.mxu1 }
0x13d9   :  { %v936_v9 = vadd.f32 %v930_v17, %v186_v14 }
0x13da   :  { %v2133_v18 = vpop.f32.mrf.mxu1 }
0x13db   :  { %v1930_v42 = vmul.f32 -1.442695, %v936_v9 }
0x13dc   :  { %v933_v20 = vpop.f32.mrf.mxu1 }
0x13de   :  { %v2134_v22 = vpop.f32.mrf.mxu1 }
0x13df   :  { %v2254_v22 = vld [vmem:[#allocation8 + $0x10] sm:$0xff]  }
0x13e0   :  { %v1160_v23 = vpop.f32.mrf.mxu1  ;;  %2166 = vmatpush3.bf16.msra.mxu0 %v2254_v22 }
0x13e1   :  { %v1166_v24 = vadd.f32 %v1160_v23, %v1070_v7  ;;  %2179 = vmatprep.subr.bf16.mxu0 %v2484_v0 }
0x13e2   :  { %v2153_v26 = vpop.f32.mrf.mxu1 }
0x13e3   :  { %2321 = vtanh.f32 %v1166_v24  ;;  %v1946_v28 = vmul.f32 -1.442695, %v1166_v24 }
0x13e4   :  { %v1163_v10 = vpop.f32.mrf.mxu1 }
0x13e5   :  { %2323 = vpow2.f32 %v1946_v28 }
0x13e6   :  { %v2154_v63 = vpop.f32.mrf.mxu1 }
0x13f0   :  { %v2322_v27 = vpop.eup %2321 }
0x13f1   :  { %1176 = vrot.lane.b32.xlu0 %v2322_v27, %s2487_s5 }
0x13f2   :  { %v2324_v29 = vpop.eup %2323 }
0x13f3   :  { %v1170_v30 = vadd.f32 1.0, %v2324_v29 }
0x13f5   :  { %2325 = vrcp.f32 %v1170_v30 }
0x1402   :  { %v2326_v1 = vpop.eup %2325 }
0x1403   :  { %v1174_v35 = vmul.f32 0.0, %v2326_v1 }
0x1463   :  { %v1177_v31 = vpop.permute.xlu0 %1176 }
0x1464   :  { %v1179_v33 = vmul.f32 %v2326_v1, %v1177_v31  ;;  %v1078_v31 = vadd.f32 %v2682_v15, %v2687_v21 }
0x1466   :  { %1181 = vrot.lane.b32.xlu1 %v1179_v33, %s2487_s5 }
0x14d8   :  { %v1182_v36 = vpop.permute.xlu1 %1181 }
0x14d9   :  { %v1184_v37 = vadd.f32 %v1182_v36, %v1174_v35 }
0x14db   :  { %2327 = vtanh.f32 %v1184_v37 }
0x14dc   :  { %2329 = vtanh.f32 %v936_v9 }
0x14dd   :  { %2331 = vpow2.f32 %v1930_v42 }
0x14e8   :  { %v2328_v41 = vpop.eup %2327 }
0x14e9   :  { %1187 = vrot.lane.b32.xlu0 %v2328_v41, %s2487_s5  ;;  %v2330_v34 = vpop.eup %2329 }
0x14ea   :  { %v2332_v43 = vpop.eup %2331 }
0x14eb   :  { %v940_v44 = vadd.f32 1.0, %v2332_v43 }
0x14ed   :  { %946 = vrot.lane.b32.xlu0 %v2330_v34, %s2487_s5  ;;  %2333 = vrcp.f32 %v940_v44 }
0x14fa   :  { %v2334_v48 = vpop.eup %2333 }
0x14fb   :  { %v944_v53 = vmul.f32 %v2334_v48, %v2651_v56 }
0x155b   :  { %v1188_v45 = vpop.permute.xlu0 %1187 }
0x155c   :  { %v1190_v46 = vmul.f32 %v2326_v1, %v1188_v45 }
0x155e   :  { %v2696_v47 = vpack.c.bf16 %v1190_v46, %v1190_v46 }
0x155f   :  { %v947_v50 = vpop.permute.xlu0 %946 }
0x1560   :  { %v949_v51 = vmul.f32 %v2334_v48, %v947_v50  ;;  %1204 = vrot.lane.b32.xlu1 %v2696_v47, %s2481_s20  ;;  %v2255_v50 = vld [vmem:[#allocation8 + $0x18] sm:$0xff]  }
0x1562   :  { %951 = vrot.lane.b32.xlu0 %v949_v51, %s2487_s5  ;;  %v2256_v51 = vld [vmem:[#allocation8 + $0x10] sm:$0xff]  }
0x15d2   :  { %v1205_v52 = vpop.permute.xlu1 %1204 }
0x15d3   :  { %2160 = vmatmul.mubr.msk.bf16.vlgmr.msra.gmra.mxu1 %vm111_vm1, %v1205_v52 }
0x15d4   :  { %v952_v54 = vpop.permute.xlu0 %951  ;;  %2175 = vmatprep.mubr.msk.bf16.mxu1 %vm2485_vm0, %v2484_v0  ;;  %2172 = vmatpush3.bf16.msra.mxu1 %v2255_v50 }
0x15d5   :  { %v954_v61 = vadd.f32 %v952_v54, %v944_v53  ;;  %2173 = vmatprep.subr.bf16.mxu1 %v2484_v0 }
0x15d7   :  { %2335 = vtanh.f32 %v954_v61 }
0x15d8   :  { %2174 = vmatpush3.bf16.msra.mxu1 %v2256_v51 }
0x15d9   :  { %2187 = vmatprep.subr.bf16.mxu1 %v2484_v0 }
0x15e4   :  { %v2336_v55 = vpop.eup %2335 }
0x15e5   :  { %957 = vrot.lane.b32.xlu0 %v2336_v55, %s2487_s5 }
0x15e9   :  { %674 = vrot.lane.b32.xlu0 %v2625_v16, %s2481_s20 }
0x15ed   :  { %868 = vrot.lane.b32.xlu0 %v2664_v62, %s2481_s20 }
0x1657   :  { %v958_v57 = vpop.permute.xlu0 %957 }
0x1658   :  { %v960_v18 = vmul.f32 %v2334_v48, %v958_v57  ;;  %v1081_v57 = vadd.f32 %v2712_v60, %v2687_v21 }
0x165a   :  { %v1990_v20 = vpack.c.bf16 %v960_v18, %v960_v18 }
0x165b   :  { %v675_v58 = vpop.permute.xlu0 %674 }
0x165c   :  { %678 = vst.msk [vmem:[#allocation9 + $0x10] sm:$0xf] %vm289_vm2, %v675_v58 }
0x165f   :  { %v869_v56 = vpop.permute.xlu0 %868 }
0x1660   :  { %872 = vst.msk [vmem:[#allocation9 + $0x18] sm:$0xf] %vm289_vm2, %v869_v56 }
0x1693   :  { %v1255_v25 = vpop.f32.mrf.mxu1 }
0x1694   :  { %v1261_v3 = vadd.f32 %v1255_v25, %v1073_v32 }
0x1695   :  { %v2161_v4 = vpop.f32.mrf.mxu1 }
0x1696   :  { %2337 = vtanh.f32 %v1261_v3  ;;  %v1951_v62 = vmul.f32 -1.442695, %v1261_v3 }
0x1697   :  { %v1258_v16 = vpop.f32.mrf.mxu1 }
0x1698   :  { %2339 = vpow2.f32 %v1951_v62 }
0x1699   :  { %v2162_v5 = vpop.f32.mrf.mxu1 }
0x16a3   :  { %v2338_v6 = vpop.eup %2337 }
0x16a4   :  { %1271 = vrot.lane.b32.xlu1 %v2338_v6, %s2487_s5 }
0x16a5   :  { %v2340_v59 = vpop.eup %2339 }
0x16a6   :  { %v1265_v8 = vadd.f32 1.0, %v2340_v59 }
0x16a8   :  { %2341 = vrcp.f32 %v1265_v8 }
0x16b5   :  { %v2342_v49 = vpop.eup %2341 }
0x16b6   :  { %v1269_v13 = vmul.f32 %v2342_v49, %v1184_v37 }
0x1716   :  { %v1272_v11 = vpop.permute.xlu1 %1271 }
0x1717   :  { %v1274_v12 = vmul.f32 %v2342_v49, %v1272_v11  ;;  %v2257_v11 = vld [vmem:[#allocation8 + $0x18] sm:$0xff]  }
0x1719   :  { %1276 = vrot.lane.b32.xlu1 %v1274_v12, %s2487_s5  ;;  %v2258_v12 = vld [vmem:[#allocation8 + $0x10] sm:$0xff]  }
0x178b   :  { %v1277_v14 = vpop.permute.xlu1 %1276 }
0x178c   :  { %v1279_v17 = vadd.f32 %v1277_v14, %v1269_v13 }
0x178e   :  { %2343 = vtanh.f32 %v1279_v17 }
0x179b   :  { %v2344_v9 = vpop.eup %2343 }
0x179c   :  { %1282 = vrot.lane.b32.xlu1 %v2344_v9, %s2487_s5 }
0x17a0   :  { %771 = vrot.lane.b32.xlu1 %v2638_v40, %s2481_s20 }
0x17a4   :  { %965 = vrot.lane.b32.xlu1 %v1990_v20, %s2481_s20 }
0x180e   :  { %v1283_v7 = vpop.permute.xlu1 %1282 }
0x180f   :  { %v1285_v23 = vmul.f32 %v2342_v49, %v1283_v7 }
0x1811   :  { %v2723_v24 = vpack.c.bf16 %v1285_v23, %v1285_v23 }
0x1812   :  { %v772_v26 = vpop.permute.xlu1 %771 }
0x1813   :  { %775 = vst.msk [vmem:[#allocation9 + $0x14] sm:$0xf] %vm289_vm2, %v772_v26  ;;  %1299 = vrot.lane.b32.xlu0 %v2723_v24, %s2481_s20 }
0x1816   :  { %v966_v40 = vpop.permute.xlu1 %965 }
0x1817   :  { %969 = vst.msk [vmem:[#allocation9 + $0x1c] sm:$0xf] %vm289_vm2, %v966_v40 }
0x181a   :  { %v2251_v10 = vld [vmem:[#allocation9 + $0x10] sm:$0xff]  }
0x181b   :  { %2143 = vmatprep.mubr.msk.bf16.mxu0 %vm111_vm1, %v2251_v10 }
0x181e   :  { %v2252_v63 = vld [vmem:[#allocation9 + $0x18] sm:$0xff]  }
0x181f   :  { %2144 = vmatmul.mubr.msk.bf16.gmra.mxu0 %vm111_vm1, %v2252_v63 }
0x1820   :  { %2167 = vmatprep.mubr.msk.bf16.mxu0 %vm2485_vm0, %v2484_v0 }
0x1885   :  { %v1300_v27 = vpop.permute.xlu0 %1299 }
0x1886   :  { %2168 = vmatmul.mubr.msk.bf16.vlgmr.msra.gmra.mxu0 %vm111_vm1, %v1300_v27 }
0x1887   :  { %2183 = vmatprep.mubr.msk.bf16.mxu0 %vm2485_vm0, %v2484_v0  ;;  %2180 = vmatpush3.bf16.msra.mxu0 %v2257_v11 }
0x1888   :  { %2181 = vmatprep.subr.bf16.mxu0 %v2484_v0 }
0x188b   :  { %2182 = vmatpush3.bf16.msra.mxu0 %v2258_v12 }
0x188c   :  { %2195 = vmatprep.subr.bf16.mxu0 %v2484_v0 }
0x18df   :  { %v2736_v28 = vpop.f32.mrf.mxu0 }
0x18e1   :  { %v2738_v29 = vpop.f32.mrf.mxu0 }
0x18e2   :  { %v1086_v19 = vadd.f32 %v2687_v21, %v2738_v29 }
0x18e3   :  { %v2740_v30 = vpop.f32.mrf.mxu0 }
0x18e5   :  { %v2742_v1 = vpop.f32.mrf.mxu0 }
0x1946   :  { %v1350_v33 = vpop.f32.mrf.mxu0 }
0x1947   :  { %v1356_v35 = vadd.f32 %v1350_v33, %v1078_v31 }
0x1948   :  { %v2169_v36 = vpop.f32.mrf.mxu0 }
0x1949   :  { %2345 = vtanh.f32 %v1356_v35  ;;  %v1956_v41 = vmul.f32 -1.442695, %v1356_v35 }
0x194a   :  { %v1353_v37 = vpop.f32.mrf.mxu0 }
0x194b   :  { %2347 = vpow2.f32 %v1956_v41 }
0x194c   :  { %v2170_v38 = vpop.f32.mrf.mxu0 }
0x194d   :  { %v2259_v38 = vld [vmem:[#allocation8 + $0x18] sm:$0xff]  }
0x1956   :  { %v2346_v39 = vpop.eup %2345 }
0x1957   :  { %1366 = vrot.lane.b32.xlu1 %v2346_v39, %s2487_s5  ;;  %v2260_v39 = vld [vmem:[#allocation8 + $0x10] sm:$0xff]  }
0x1958   :  { %v2348_v34 = vpop.eup %2347 }
0x1959   :  { %v1360_v42 = vadd.f32 1.0, %v2348_v34 }
0x195b   :  { %2349 = vrcp.f32 %v1360_v42 }
0x1968   :  { %v2350_v43 = vpop.eup %2349 }
0x1969   :  { %v1364_v15 = vmul.f32 %v2350_v43, %v1279_v17 }
0x19c9   :  { %v1367_v44 = vpop.permute.xlu1 %1366 }
0x19ca   :  { %v1369_v45 = vmul.f32 %v2350_v43, %v1367_v44 }
0x19cc   :  { %1371 = vrot.lane.b32.xlu0 %v1369_v45, %s2487_s5  ;;  %v1089_v45 = vadd.f32 %v2687_v21, %v2742_v1 }
0x1a3e   :  { %v1372_v46 = vpop.permute.xlu0 %1371 }
0x1a3f   :  { %v1374_v48 = vadd.f32 %v1372_v46, %v1364_v15 }
0x1a41   :  { %2351 = vtanh.f32 %v1374_v48 }
0x1a4e   :  { %v2352_v52 = vpop.eup %2351 }
0x1a4f   :  { %1377 = vrot.lane.b32.xlu1 %v2352_v52, %s2487_s5 }
0x1ac1   :  { %v1378_v53 = vpop.permute.xlu1 %1377 }
0x1ac2   :  { %v1380_v54 = vmul.f32 %v2350_v43, %v1378_v53 }
0x1ac4   :  { %v2751_v61 = vpack.c.bf16 %v1380_v54, %v1380_v54 }
0x1ac6   :  { %1394 = vrot.lane.b32.xlu0 %v2751_v61, %s2481_s20 }
0x1b38   :  { %v1395_v55 = vpop.permute.xlu0 %1394 }
0x1b39   :  { %2176 = vmatmul.mubr.msk.bf16.vlgmr.msra.gmra.mxu1 %vm111_vm1, %v1395_v55 }
0x1b3a   :  { %2191 = vmatprep.mubr.msk.bf16.mxu1 %vm2485_vm0, %v2484_v0  ;;  %2188 = vmatpush3.bf16.msra.mxu1 %v2259_v38 }
0x1b3b   :  { %2189 = vmatprep.subr.bf16.mxu1 %v2484_v0 }
0x1b3e   :  { %2190 = vmatpush3.bf16.msra.mxu1 %v2260_v39 }
0x1b3f   :  { %2203 = vmatprep.subr.bf16.mxu1 %v2484_v0 }
0x1bf9   :  { %v1445_v58 = vpop.f32.mrf.mxu1 }
0x1bfa   :  { %v1451_v56 = vadd.f32 %v1445_v58, %v1081_v57 }
0x1bfb   :  { %v2177_v2 = vpop.f32.mrf.mxu1 }
0x1bfc   :  { %2353 = vtanh.f32 %v1451_v56  ;;  %v1961_v4 = vmul.f32 -1.442695, %v1451_v56 }
0x1bfd   :  { %v1448_v32 = vpop.f32.mrf.mxu1 }
0x1bfe   :  { %2355 = vpow2.f32 %v1961_v4 }
0x1bff   :  { %v2178_v25 = vpop.f32.mrf.mxu1 }
0x1c00   :  { %v2261_v25 = vld [vmem:[#allocation8 + $0x18] sm:$0xff]  }
0x1c09   :  { %v2354_v3 = vpop.eup %2353 }
0x1c0a   :  { %1461 = vrot.lane.b32.xlu1 %v2354_v3, %s2487_s5  ;;  %v2262_v3 = vld [vmem:[#allocation8 + $0x10] sm:$0xff]  }
0x1c0b   :  { %v2356_v16 = vpop.eup %2355 }
0x1c0c   :  { %v1455_v5 = vadd.f32 1.0, %v2356_v16 }
0x1c0e   :  { %2357 = vrcp.f32 %v1455_v5 }
0x1c1b   :  { %v2358_v6 = vpop.eup %2357 }
0x1c1c   :  { %v1459_v60 = vmul.f32 %v2358_v6, %v1374_v48 }
0x1c7c   :  { %v1462_v62 = vpop.permute.xlu1 %1461 }
0x1c7d   :  { %v1464_v59 = vmul.f32 %v2358_v6, %v1462_v62 }
0x1c7f   :  { %1466 = vrot.lane.b32.xlu0 %v1464_v59, %s2487_s5  ;;  %v1094_v59 = vadd.f32 %v2736_v28, %v2687_v21 }
0x1cf1   :  { %v1467_v8 = vpop.permute.xlu0 %1466 }
0x1cf2   :  { %v1469_v49 = vadd.f32 %v1467_v8, %v1459_v60 }
0x1cf4   :  { %2359 = vtanh.f32 %v1469_v49 }
0x1d01   :  { %v2360_v13 = vpop.eup %2359 }
0x1d02   :  { %1472 = vrot.lane.b32.xlu1 %v2360_v13, %s2487_s5 }
0x1d74   :  { %v1473_v14 = vpop.permute.xlu1 %1472 }
0x1d75   :  { %v1475_v17 = vmul.f32 %v2358_v6, %v1473_v14 }
0x1d77   :  { %v2765_v9 = vpack.c.bf16 %v1475_v17, %v1475_v17 }
0x1d79   :  { %1489 = vrot.lane.b32.xlu0 %v2765_v9, %s2481_s20 }
0x1deb   :  { %v1490_v18 = vpop.permute.xlu0 %1489 }
0x1dec   :  { %2184 = vmatmul.mubr.msk.bf16.vlgmr.msra.gmra.mxu0 %vm111_vm1, %v1490_v18 }
0x1ded   :  { %2199 = vmatprep.mubr.msk.bf16.mxu0 %vm2485_vm0, %v2484_v0  ;;  %2196 = vmatpush3.bf16.msra.mxu0 %v2261_v25 }
0x1dee   :  { %2197 = vmatprep.subr.bf16.mxu0 %v2484_v0 }
0x1df1   :  { %2198 = vmatpush3.bf16.msra.mxu0 %v2262_v3 }
0x1eac   :  { %v1540_v20 = vpop.f32.mrf.mxu0 }
0x1ead   :  { %v1546_v22 = vadd.f32 %v1540_v20, %v1086_v19 }
0x1eae   :  { %v2185_v7 = vpop.f32.mrf.mxu0 }
0x1eaf   :  { %2361 = vtanh.f32 %v1546_v22  ;;  %v1966_v10 = vmul.f32 -1.442695, %v1546_v22 }
0x1eb0   :  { %v1543_v23 = vpop.f32.mrf.mxu0 }
0x1eb1   :  { %2363 = vpow2.f32 %v1966_v10 }
0x1eb2   :  { %v2186_v26 = vpop.f32.mrf.mxu0 }
0x1eb3   :  { %v2263_v26 = vld [vmem:[#allocation8 + $0x18] sm:$0xff]  }
0x1ebc   :  { %v2362_v40 = vpop.eup %2361 }
0x1ebd   :  { %1556 = vrot.lane.b32.xlu1 %v2362_v40, %s2487_s5  ;;  %v2264_v40 = vld [vmem:[#allocation8 + $0x10] sm:$0xff]  }
0x1ebe   :  { %v2364_v63 = vpop.eup %2363 }
0x1ebf   :  { %v1550_v27 = vadd.f32 1.0, %v2364_v63 }
0x1ec1   :  { %2365 = vrcp.f32 %v1550_v27 }
0x1ece   :  { %v2366_v31 = vpop.eup %2365 }
0x1ecf   :  { %v1554_v29 = vmul.f32 %v2366_v31, %v1469_v49 }
0x1f2f   :  { %v1557_v33 = vpop.permute.xlu1 %1556 }
0x1f30   :  { %v1559_v35 = vmul.f32 %v2366_v31, %v1557_v33 }
0x1f32   :  { %1561 = vrot.lane.b32.xlu0 %v1559_v35, %s2487_s5  ;;  %v1097_v35 = vadd.f32 %v2740_v30, %v2687_v21 }
0x1fa4   :  { %v1562_v36 = vpop.permute.xlu0 %1561 }
0x1fa5   :  { %v1564_v37 = vadd.f32 %v1562_v36, %v1554_v29 }
0x1fa7   :  { %2367 = vtanh.f32 %v1564_v37 }
0x1fb4   :  { %v2368_v41 = vpop.eup %2367 }
0x1fb5   :  { %1567 = vrot.lane.b32.xlu1 %v2368_v41, %s2487_s5 }
0x2027   :  { %v1568_v34 = vpop.permute.xlu1 %1567 }
0x2028   :  { %v1570_v42 = vmul.f32 %v2366_v31, %v1568_v34 }
0x202a   :  { %v2779_v43 = vpack.c.bf16 %v1570_v42, %v1570_v42 }
0x202c   :  { %1584 = vrot.lane.b32.xlu0 %v2779_v43, %s2481_s20 }
0x209e   :  { %v1585_v44 = vpop.permute.xlu0 %1584 }
0x209f   :  { %2192 = vmatmul.mubr.msk.bf16.vlgmr.msra.gmra.mxu1 %vm111_vm1, %v1585_v44 }
0x20a0   :  { %2207 = vmatprep.mubr.msk.bf16.mxu1 %vm2485_vm0, %v2484_v0  ;;  %2204 = vmatpush3.bf16.msra.mxu1 %v2263_v26 }
0x20a1   :  { %2205 = vmatprep.subr.bf16.mxu1 %v2484_v0 }
0x20a4   :  { %2206 = vmatpush3.bf16.msra.mxu1 %v2264_v40 }
0x215f   :  { %v1635_v15 = vpop.f32.mrf.mxu1 }
0x2160   :  { %v1641_v46 = vadd.f32 %v1635_v15, %v1089_v45 }
0x2161   :  { %v2193_v48 = vpop.f32.mrf.mxu1 }
0x2162   :  { %2369 = vtanh.f32 %v1641_v46  ;;  %v1971_v53 = vmul.f32 -1.442695, %v1641_v46 }
0x2163   :  { %v1638_v50 = vpop.f32.mrf.mxu1 }
0x2164   :  { %2371 = vpow2.f32 %v1971_v53 }
0x2165   :  { %v2194_v51 = vpop.f32.mrf.mxu1 }
0x216f   :  { %v2370_v52 = vpop.eup %2369 }
0x2170   :  { %1651 = vrot.lane.b32.xlu1 %v2370_v52, %s2487_s5 }
0x2171   :  { %v2372_v54 = vpop.eup %2371 }
0x2172   :  { %v1645_v55 = vadd.f32 1.0, %v2372_v54 }
0x2174   :  { %2373 = vrcp.f32 %v1645_v55 }
0x2181   :  { %v2374_v57 = vpop.eup %2373 }
0x2182   :  { %v1649_v1 = vmul.f32 %v2374_v57, %v1564_v37 }
0x21e2   :  { %v1652_v58 = vpop.permute.xlu1 %1651 }
0x21e3   :  { %v1654_v56 = vmul.f32 %v2374_v57, %v1652_v58 }
0x21e5   :  { %1656 = vrot.lane.b32.xlu0 %v1654_v56, %s2487_s5 }
0x2257   :  { %v1657_v2 = vpop.permute.xlu0 %1656 }
0x2258   :  { %v1659_v32 = vadd.f32 %v1657_v2, %v1649_v1 }
0x225a   :  { %2375 = vtanh.f32 %v1659_v32 }
0x2267   :  { %v2376_v4 = vpop.eup %2375 }
0x2268   :  { %1662 = vrot.lane.b32.xlu1 %v2376_v4, %s2487_s5 }
0x22da   :  { %v1663_v16 = vpop.permute.xlu1 %1662 }
0x22db   :  { %v1665_v5 = vmul.f32 %v2374_v57, %v1663_v16 }
0x22dd   :  { %v2792_v6 = vpack.c.bf16 %v1665_v5, %v1665_v5 }
0x22df   :  { %1679 = vrot.lane.b32.xlu0 %v2792_v6, %s2481_s20 }
0x2351   :  { %v1680_v62 = vpop.permute.xlu0 %1679 }
0x2352   :  { %2200 = vmatmul.mubr.msk.bf16.vlgmr.msra.gmra.mxu0 %vm111_vm1, %v1680_v62 }
0x2412   :  { %v1730_v60 = vpop.f32.mrf.mxu0 }
0x2413   :  { %v1736_v8 = vadd.f32 %v1730_v60, %v1094_v59 }
0x2414   :  { %v2201_v49 = vpop.f32.mrf.mxu0 }
0x2415   :  { %2377 = vtanh.f32 %v1736_v8  ;;  %v1976_v14 = vmul.f32 -1.442695, %v1736_v8 }
0x2416   :  { %v1733_v11 = vpop.f32.mrf.mxu0 }
0x2417   :  { %2379 = vpow2.f32 %v1976_v14 }
0x2418   :  { %v2202_v12 = vpop.f32.mrf.mxu0 }
0x2422   :  { %v2378_v13 = vpop.eup %2377 }
0x2423   :  { %1746 = vrot.lane.b32.xlu1 %v2378_v13, %s2487_s5 }
0x2424   :  { %v2380_v17 = vpop.eup %2379 }
0x2425   :  { %v1740_v18 = vadd.f32 1.0, %v2380_v17 }
0x2427   :  { %2381 = vrcp.f32 %v1740_v18 }
0x2434   :  { %v2382_v19 = vpop.eup %2381 }
0x2435   :  { %v1744_v28 = vmul.f32 %v2382_v19, %v1659_v32 }
0x2495   :  { %v1747_v20 = vpop.permute.xlu1 %1746 }
0x2496   :  { %v1749_v22 = vmul.f32 %v2382_v19, %v1747_v20 }
0x2498   :  { %1751 = vrot.lane.b32.xlu0 %v1749_v22, %s2487_s5 }
0x250a   :  { %v1752_v7 = vpop.permute.xlu0 %1751 }
0x250b   :  { %v1754_v23 = vadd.f32 %v1752_v7, %v1744_v28 }
0x250d   :  { %2383 = vtanh.f32 %v1754_v23 }
0x251a   :  { %v2384_v10 = vpop.eup %2383 }
0x251b   :  { %1757 = vrot.lane.b32.xlu1 %v2384_v10, %s2487_s5 }
0x258d   :  { %v1758_v63 = vpop.permute.xlu1 %1757 }
0x258e   :  { %v1760_v27 = vmul.f32 %v2382_v19, %v1758_v63 }
0x2590   :  { %v1761_v31 = vpack.c.bf16 %v1760_v27, %v1760_v27 }
0x2592   :  { %1774 = vrot.lane.b32.xlu0 %v1761_v31, %s2481_s20 }
0x2604   :  { %v1775_v33 = vpop.permute.xlu0 %1774 }
0x2605   :  { %2208 = vmatmul.mubr.msk.bf16.vlgmr.msra.gmra.mxu1 %vm111_vm1, %v1775_v33 }
0x26c5   :  { %v1825_v29 = vpop.f32.mrf.mxu1 }
0x26c6   :  { %v1831_v36 = vadd.f32 %v1825_v29, %v1097_v35 }
0x26c7   :  { %v2209_v37 = vpop.f32.mrf.mxu1 }
0x26c8   :  { %2385 = vtanh.f32 %v1831_v36  ;;  %v1981_v41 = vmul.f32 -1.442695, %v1831_v36 }
0x26c9   :  { %v1828_v0 = vpop.f32.mrf.mxu1 }
0x26ca   :  { %2387 = vpow2.f32 %v1981_v41 }
0x26cb   :  { %v2210_v38 = vpop.f32.mrf.mxu1 }
0x26d5   :  { %v2386_v39 = vpop.eup %2385 }
0x26d6   :  { %1841 = vrot.lane.b32.xlu1 %v2386_v39, %s2487_s5 }
0x26d7   :  { %v2388_v34 = vpop.eup %2387 }
0x26d8   :  { %v1835_v42 = vadd.f32 1.0, %v2388_v34 }
0x26da   :  { %2389 = vrcp.f32 %v1835_v42 }
0x26e7   :  { %v2390_v44 = vpop.eup %2389 }
0x26e8   :  { %v1839_v21 = vmul.f32 %v2390_v44, %v1754_v23 }
0x2748   :  { %v1842_v45 = vpop.permute.xlu1 %1841 }
0x2749   :  { %v1844_v15 = vmul.f32 %v2390_v44, %v1842_v45 }
0x274b   :  { %1846 = vrot.lane.b32.xlu0 %v1844_v15, %s2487_s5 }
0x274f   :  { %1195 = vrot.lane.b32.xlu0 %v2696_v47, %s2481_s20 }
0x2753   :  { %1385 = vrot.lane.b32.xlu0 %v2751_v61, %s2481_s20 }
0x2757   :  { %1575 = vrot.lane.b32.xlu0 %v2779_v43, %s2481_s20 }
0x275b   :  { %1765 = vrot.lane.b32.xlu0 %v1761_v31, %s2481_s20 }
0x27bd   :  { %v1847_v30 = vpop.permute.xlu0 %1846 }
0x27be   :  { %v1849_v46 = vadd.f32 %v1847_v30, %v1839_v21 }
0x27c0   :  { %2391 = vtanh.f32 %v1849_v46 }
0x27c1   :  { %v1196_v48 = vpop.permute.xlu0 %1195 }
0x27c2   :  { %1198 = vst.msk [vmem:[#allocation9] sm:$0xf] %vm289_vm2, %v1196_v48 }
0x27c5   :  { %v1386_v50 = vpop.permute.xlu0 %1385 }
0x27c6   :  { %1388 = vst.msk [vmem:[#allocation9 + $0x8] sm:$0xf] %vm289_vm2, %v1386_v50 }
0x27c9   :  { %v1576_v51 = vpop.permute.xlu0 %1575 }
0x27ca   :  { %1578 = vst.msk [vmem:[#allocation9 + $0x10] sm:$0xf] %vm289_vm2, %v1576_v51 }
0x27cd   :  { %v2392_v47 = vpop.eup %2391  ;;  %v1766_v61 = vpop.permute.xlu0 %1765 }
0x27ce   :  { %1768 = vst.msk [vmem:[#allocation9 + $0x18] sm:$0xf] %vm289_vm2, %v1766_v61  ;;  %1852 = vrot.lane.b32.xlu1 %v2392_v47, %s2487_s5 }
0x27d2   :  { %1290 = vrot.lane.b32.xlu1 %v2723_v24, %s2481_s20 }
0x27d6   :  { %1480 = vrot.lane.b32.xlu1 %v2765_v9, %s2481_s20 }
0x27da   :  { %1670 = vrot.lane.b32.xlu1 %v2792_v6, %s2481_s20 }
0x2840   :  { %v1853_v43 = vpop.permute.xlu1 %1852 }
0x2841   :  { %v1855_v52 = vmul.f32 %v2390_v44, %v1853_v43 }
0x2843   :  { %v1998_v53 = vpack.c.bf16 %v1855_v52, %v1855_v52 }
0x2844   :  { %v1291_v54 = vpop.permute.xlu1 %1290 }
0x2845   :  { %1293 = vst.msk [vmem:[#allocation9 + $0x4] sm:$0xf] %vm289_vm2, %v1291_v54  ;;  %1860 = vrot.lane.b32.xlu1 %v1998_v53, %s2481_s20 }
0x2848   :  { %v1481_v55 = vpop.permute.xlu1 %1480 }
0x2849   :  { %1483 = vst.msk [vmem:[#allocation9 + $0xc] sm:$0xf] %vm289_vm2, %v1481_v55 }
0x284c   :  { %v1671_v57 = vpop.permute.xlu1 %1670 }
0x284d   :  { %1673 = vst.msk [vmem:[#allocation9 + $0x14] sm:$0xf] %vm289_vm2, %v1671_v57 }
0x28b7   :  { %v1861_v24 = vpop.permute.xlu1 %1860 }
0x28b8   :  { %1863 = vst.msk [vmem:[#allocation9 + $0x1c] sm:$0xf] %vm289_vm2, %v1861_v24 }
0x28b9   :  { %2464 = shalt.err (!%p2461_p5)
}
0x28ba   :  { %1875 = dma.vmem_to_hbm [thread:$0]  %s1870_s8, 512, %s2842_s4, [#allocation5], %s2481_s20, %s2481_s20, %s2482_s21  }
0x28bb   :  { %2477 = dma.done.wait [#allocation5], 512  }
0x28bc   :  { %2478 = vsyncadd [#allocation5], 4294966784 }
0x28bd   :  { %1879 = vsyncpa [#allocation4], 1 }
0x28be   :  { %1880 = vsyncpa [#allocation7], 1 }
0x28bf   :  { %1881 = vsyncpa [#allocation5], 1 }

</bundles_post_ra>
